<compile_context>
chip_gen: v5e
topology: v5e:2x2
jax: 0.10.0
libtpu: 0.0.40
codegen_flags: <defaults>
</compile_context>

<pallas_src>
import functools

import numpy as np
import jax
import jax.numpy as jnp
from jax.experimental import pallas as pl
from jax.experimental.pallas import tpu as pltpu

BN_EPS = 1e-5
LEAKY_SLOPE = 0.01                     # nn.LeakyReLU default
CPAD = 128                             # lane-dense channel padding for conv outputs
CONV_CFG = ((8, 4), (4, 2), (3, 1))    # (kernel, stride) for conv1..conv3

_VMEM = pl.BlockSpec(memory_space=pltpu.MemorySpace.VMEM)


# ---------------------------------------------------------------------------
# Pallas kernels
# ---------------------------------------------------------------------------
def _conv_matmul_kernel(a_ref, w_ref, b_ref, o_ref):
    """o = relu(a @ w + b); BatchNorm already folded into w/b, lane-dense N."""
    y = jnp.dot(a_ref[...], w_ref[...], preferred_element_type=jnp.float32)
    o_ref[...] = jnp.maximum(y + b_ref[...], 0.0)


def _duel_head_kernel(f_ref, w1_ref, b1_ref, w2_ref, b2_ref, q_ref, *, n_actions):
    """Entire dueling head fused into one kernel.

    w1 = [Alinear1 | Vlinear1] packed -> (lin_in_pad, 256)
    w2 = block-diagonal (256, n_actions+1): [:128,:nA]=Alinear2.T, [128:,nA:]=Vlinear2.T
    q  = Vx + (Ax - Ax.mean())   (scalar mean over ALL elements, like torch .mean())
    """
    h = jnp.dot(f_ref[...], w1_ref[...], preferred_element_type=jnp.float32)
    h = h + b1_ref[...]
    h = jnp.where(h >= 0.0, h, LEAKY_SLOPE * h)            # LeakyReLU
    y = jnp.dot(h, w2_ref[...], preferred_element_type=jnp.float32)
    y = y + b2_ref[...]
    ax = y[:, :n_actions]
    vx = y[:, n_actions:n_actions + 1]
    mean = jnp.sum(ax) / ax.size
    q_ref[...] = vx + (ax - mean)


# ---------------------------------------------------------------------------
# pallas_call wrappers
# ---------------------------------------------------------------------------
def conv_matmul(patches, w, b, *, tile_m=256):
    """relu(patches @ w + b) with an M-blocked, 'parallel' grid."""
    M, K = patches.shape
    N = w.shape[1]
    tm = M if M <= tile_m else tile_m
    grid = (pl.cdiv(M, tm),)
    return pl.pallas_call(
        _conv_matmul_kernel,
        out_shape=jax.ShapeDtypeStruct((M, N), jnp.float32),
        grid_spec=pltpu.PrefetchScalarGridSpec(
            num_scalar_prefetch=0,
            grid=grid,
            in_specs=[
                pl.BlockSpec((tm, K), lambda i: (i, 0)),   # patch rows (pipelined)
                pl.BlockSpec((K, N), lambda i: (0, 0)),    # folded weights (resident)
                pl.BlockSpec((1, N), lambda i: (0, 0)),    # folded bias
            ],
            out_specs=pl.BlockSpec((tm, N), lambda i: (i, 0)),
        ),
        compiler_params=pltpu.CompilerParams(
            dimension_semantics=("parallel",),
            vmem_limit_bytes=32 * 1024 * 1024,
        ),
    )(patches, w, b)
    # TODO(synk): cast patches/weights to bf16 (f32 accumulation) on v6e/v7x for
    # 2x MXU throughput; kept f32 here for bit-level parity with the reference.


def duel_head(f, w1, b1, w2, b2, n_actions):
    M = f.shape[0]
    kern = functools.partial(_duel_head_kernel, n_actions=n_actions)
    return pl.pallas_call(
        kern,
        out_shape=jax.ShapeDtypeStruct((M, n_actions), jnp.float32),
        in_specs=[_VMEM] * 5,
        out_specs=_VMEM,
    )(f, w1, b1, w2, b2)


# ---------------------------------------------------------------------------
# Glue: channels-last im2col (plain JAX slicing only, no transposes)
# ---------------------------------------------------------------------------
def im2col_nhwc(x, kh, kw, stride):
    """x: (N, H, W, C) -> (N*OH*OW, kh*kw*C), feature order (kh, kw, C)."""
    n, h, w, c = x.shape
    oh = (h - kh) // stride + 1
    ow = (w - kw) // stride + 1
    parts = []
    for i in range(kh):
        for j in range(kw):
            parts.append(x[:, i:i + stride * oh:stride, j:j + stride * ow:stride, :])
    p = jnp.stack(parts, axis=3)                   # (N, OH, OW, kh*kw, C)
    return p.reshape(n * oh * ow, kh * kw * c), oh, ow
    # TODO(synk): express the window gather via a Pallas BlockSpec index_map
    # instead of materializing the duplicated patch matrix in HBM.


def duel_cnn_forward(x, pp, *, output_size):
    """x: (N, C, H, W) NCHW like PyTorch; returns (N, output_size)."""
    n = x.shape[0]
    x = x.transpose(0, 2, 3, 1)                    # one-time NCHW -> NHWC
    for (kh, stride), (wmat, bias) in zip(CONV_CFG, pp["convs"]):
        patches, oh, ow = im2col_nhwc(x, kh, kh, stride)
        y = conv_matmul(patches, wmat, bias)       # (N*OH*OW, CPAD)
        x = y.reshape(n, oh, ow, CPAD)             # stays channels-last
    f = x.reshape(n, -1)                           # (N, OH*OW*CPAD)
    return duel_head(f, pp["w1"], pp["b1"], pp["w2"], pp["b2"], output_size)


# ---------------------------------------------------------------------------
# One-time host-side weight packing (BN fold, padding, layout, A/V concat)
# ---------------------------------------------------------------------------
def conv2d_size_calc(w, h, kernel_size, stride):
    next_w = (w - (kernel_size - 1) - 1) // stride + 1
    next_h = (h - (kernel_size - 1) - 1) // stride + 1
    return next_w, next_h


def _pack_conv(w, b, bn, ic_pad, oc_pad):
    """Fold BN into a (kh*kw*ic_pad, oc_pad) weight and (1, oc_pad) bias."""
    oc, ic, kh, kw = w.shape
    gamma, beta, rmean, rvar = bn
    scale = gamma / jnp.sqrt(rvar + BN_EPS)
    shift = beta - rmean * scale
    w_ic = jnp.zeros((oc, ic_pad, kh, kw), jnp.float32).at[:, :ic].set(w)
    wm = w_ic.transpose(2, 3, 1, 0).reshape(kh * kw * ic_pad, oc)   # (kh,kw,C) rows
    wm = wm * scale[None, :]
    bm = b * scale + shift
    wm = jnp.zeros((kh * kw * ic_pad, oc_pad), jnp.float32).at[:, :oc].set(wm)
    bm = jnp.zeros((oc_pad,), jnp.float32).at[:oc].set(bm)
    return wm, bm.reshape(1, oc_pad)


def _pack_head_w1(w_lin, oh, ow, c, c_pad):
    """(out, C*OH*OW) NCHW-flatten order -> (out, OH*OW*c_pad) NHWC-pad order."""
    out = w_lin.shape[0]
    w4 = w_lin.reshape(out, c, oh, ow).transpose(0, 2, 3, 1)        # (out, OH, OW, C)
    w4 = jnp.zeros((out, oh, ow, c_pad), jnp.float32).at[..., :c].set(w4)
    return w4.reshape(out, oh * ow * c_pad)


def pack_params(p, h, w, output_size):
    cw, ch = conv2d_size_calc(w, h, 8, 4)
    cw, ch = conv2d_size_calc(cw, ch, 4, 2)
    cw, ch = conv2d_size_calc(cw, ch, 3, 1)

    convs = (
        _pack_conv(p["w1"], p["b1"], p["bn1"], ic_pad=4,    oc_pad=CPAD),
        _pack_conv(p["w2"], p["b2"], p["bn2"], ic_pad=CPAD, oc_pad=CPAD),
        _pack_conv(p["w3"], p["b3"], p["bn3"], ic_pad=CPAD, oc_pad=CPAD),
    )

    a1 = _pack_head_w1(p["aw1"], ch, cw, 64, CPAD)
    v1 = _pack_head_w1(p["vw1"], ch, cw, 64, CPAD)
    w1 = jnp.concatenate([a1, v1], axis=0).T                 # (lin_in_pad, 256)
    b1 = jnp.concatenate([p["ab1"], p["vb1"]]).reshape(1, 256)

    na = output_size
    w2 = jnp.zeros((256, na + 1), jnp.float32)
    w2 = w2.at[:128, :na].set(p["aw2"].T)
    w2 = w2.at[128:, na:].set(p["vw2"].T)
    b2 = jnp.concatenate([p["ab2"], p["vb2"]]).reshape(1, na + 1)

    return {"convs": convs, "w1": w1, "b1": b1, "w2": w2, "b2": b2}


# ---------------------------------------------------------------------------
# Deterministic parameter construction (shapes from DuelCNN.__init__)
# ---------------------------------------------------------------------------
def make_params(h, w, output_size, key):
    ks = list(jax.random.split(key, 24))

    def nrm(k, shape, scale):
        return scale * jax.random.normal(k, shape, jnp.float32)

    def bn_params(k, c):
        k1, k2, k3, k4 = jax.random.split(k, 4)
        gamma = 1.0 + 0.1 * jax.random.normal(k1, (c,), jnp.float32)
        beta = 0.1 * jax.random.normal(k2, (c,), jnp.float32)
        rmean = 0.1 * jax.random.normal(k3, (c,), jnp.float32)
        rvar = 1.0 + 0.1 * jax.random.uniform(k4, (c,), jnp.float32)
        return (gamma, beta, rmean, rvar)

    cw, ch = conv2d_size_calc(w, h, 8, 4)
    cw, ch = conv2d_size_calc(cw, ch, 4, 2)
    cw, ch = conv2d_size_calc(cw, ch, 3, 1)
    lin_in = cw * ch * 64

    p = {
        "w1": nrm(ks[0], (32, 4, 8, 8), 0.05),  "b1": nrm(ks[1], (32,), 0.05),
        "bn1": bn_params(ks[2], 32),
        "w2": nrm(ks[3], (64, 32, 4, 4), 0.05), "b2": nrm(ks[4], (64,), 0.05),
        "bn2": bn_params(ks[5], 64),
        "w3": nrm(ks[6], (64, 64, 3, 3), 0.05), "b3": nrm(ks[7], (64,), 0.05),
        "bn3": bn_params(ks[8], 64),
        "aw1": nrm(ks[9], (128, lin_in), 0.1),  "ab1": nrm(ks[10], (128,), 0.1),
        "aw2": nrm(ks[11], (output_size, 128), 0.1), "ab2": nrm(ks[12], (output_size,), 0.1),
        "vw1": nrm(ks[13], (128, lin_in), 0.1), "vb1": nrm(ks[14], (128,), 0.1),
        "vw2": nrm(ks[15], (1, 128), 0.1),      "vb2": nrm(ks[16], (1,), 0.1),
    }
    return p


# ---------------------------------------------------------------------------
# Pure-JAX reference (correctness sanity check, high-precision matmuls)
# ---------------------------------------------------------------------------
def reference_forward(x, p):
    with jax.default_matmul_precision("float32"):
        def conv(x, w, b, stride):
            y = jax.lax.conv_general_dilated(
                x, w, (stride, stride), "VALID",
                dimension_numbers=("NCHW", "OIHW", "NCHW"))
            return y + b.reshape(1, -1, 1, 1)

        def bn(y, bnp):
            g, be, rm, rv = (t.reshape(1, -1, 1, 1) for t in bnp)
            return (y - rm) / jnp.sqrt(rv + BN_EPS) * g + be

        y = jax.nn.relu(bn(conv(x, p["w1"], p["b1"], 4), p["bn1"]))
        y = jax.nn.relu(bn(conv(y, p["w2"], p["b2"], 2), p["bn2"]))
        y = jax.nn.relu(bn(conv(y, p["w3"], p["b3"], 1), p["bn3"]))
        f = y.reshape(y.shape[0], -1)
        ax = jax.nn.leaky_relu(f @ p["aw1"].T + p["ab1"], LEAKY_SLOPE)
        ax = ax @ p["aw2"].T + p["ab2"]
        vx = jax.nn.leaky_relu(f @ p["vw1"].T + p["vb1"], LEAKY_SLOPE)
        vx = vx @ p["vw2"].T + p["vb2"]
        return vx + (ax - jnp.mean(ax))


# ---------------------------------------------------------------------------
if __name__ == "__main__":
    # Smallest spatial size that keeps all three convs valid: 36x36.
    N, C, H, W = 2, 4, 36, 36
    OUTPUT_SIZE = 4

    x = jax.random.normal(jax.random.PRNGKey(0), (N, C, H, W), jnp.float32)
    params = make_params(H, W, OUTPUT_SIZE, jax.random.PRNGKey(42))
    packed = pack_params(params, H, W, OUTPUT_SIZE)     # one-time host packing

    fwd = jax.jit(functools.partial(duel_cnn_forward, output_size=OUTPUT_SIZE))
    q = fwd(x, packed)
    jax.block_until_ready(q)

    assert q.shape == (N, OUTPUT_SIZE), q.shape
    q_ref = reference_forward(x, params)
    np.testing.assert_allclose(np.asarray(q), np.asarray(q_ref), rtol=1e-2, atol=1e-2)

    print("KERNEL_OK")
</pallas_src>

<mosaic_0001>
module attributes {stable_mosaic.version = 11 : i64} {
  func.func @_conv_matmul_kernel(%arg0: i32, %arg1: memref<128x256xf32, #tpu.memory_space<vmem>>, %arg2: memref<256x128xf32, #tpu.memory_space<vmem>>, %arg3: memref<1x128xf32, #tpu.memory_space<vmem>>, %arg4: memref<128x128xf32, #tpu.memory_space<vmem>>) attributes {dimension_semantics = [#tpu.dimension_semantics<parallel>], iteration_bounds = array<i64: 1>, scalar_prefetch = 0 : i64, scratch_operands = 0 : i64, tpu.core_type = #tpu.core_type<tc>, window_params = [{transform_indices = @transform_0, window_bounds = array<i64: 128, 256>}, {pipeline_mode = #tpu.pipeline_mode<synchronous>, transform_indices = @transform_1, window_bounds = array<i64: 256, 128>}, {pipeline_mode = #tpu.pipeline_mode<synchronous>, transform_indices = @transform_2, window_bounds = array<i64: 1, 128>}, {transform_indices = @transform_3, window_bounds = array<i64: 128, 128>}]} {
    %c0 = arith.constant 0 : index
    %c0_0 = arith.constant 0 : index
    %0 = vector.load %arg1[%c0, %c0_0] : memref<128x256xf32, #tpu.memory_space<vmem>>, vector<128x256xf32>
    %c0_1 = arith.constant 0 : index
    %c0_2 = arith.constant 0 : index
    %1 = vector.load %arg2[%c0_1, %c0_2] : memref<256x128xf32, #tpu.memory_space<vmem>>, vector<256x128xf32>
    %cst = arith.constant dense<0.000000e+00> : vector<128x128xf32>
    %2 = tpu.matmul %0, %1, %cst {dimension_numbers = #tpu.dot_dimension_numbers<[1], [0], [0], [1], [0, 0, 1, 1], [], []>} : vector<128x256xf32>, vector<256x128xf32>, vector<128x128xf32> -> vector<128x128xf32>
    %c0_3 = arith.constant 0 : index
    %c0_4 = arith.constant 0 : index
    %3 = vector.load %arg3[%c0_3, %c0_4] : memref<1x128xf32, #tpu.memory_space<vmem>>, vector<1x128xf32>
    %4 = vector.broadcast %3 : vector<1x128xf32> to vector<128x128xf32>
    %5 = arith.addf %2, %4 : vector<128x128xf32>
    %cst_5 = arith.constant 0.000000e+00 : f32
    %6 = vector.broadcast %cst_5 : f32 to vector<128x128xf32>
    %7 = arith.maximumf %5, %6 : vector<128x128xf32>
    %c0_6 = arith.constant 0 : index
    %c0_7 = arith.constant 0 : index
    %8 = vector.load %arg4[%c0_6, %c0_7] : memref<128x128xf32, #tpu.memory_space<vmem>>, vector<128x128xf32>
    tpu.vector_store %arg4[%c0_6, %c0_7], %7 {strides = array<i32>} : memref<128x128xf32, #tpu.memory_space<vmem>>, vector<128x128xf32>,
    return
  }
  func.func @transform_0(%arg0: i32) -> (i32, i32) {
    %c0_i32 = arith.constant 0 : i32
    %c0_i32_0 = arith.constant 0 : i32
    return %arg0, %c0_i32 : i32, i32
  }
  func.func @transform_1(%arg0: i32) -> (i32, i32) {
    %c0_i32 = arith.constant 0 : i32
    %c0_i32_0 = arith.constant 0 : i32
    %c0_i32_1 = arith.constant 0 : i32
    return %c0_i32, %c0_i32_0 : i32, i32
  }
  func.func @transform_2(%arg0: i32) -> (i32, i32) {
    %c0_i32 = arith.constant 0 : i32
    %c0_i32_0 = arith.constant 0 : i32
    %c0_i32_1 = arith.constant 0 : i32
    return %c0_i32, %c0_i32_0 : i32, i32
  }
  func.func @transform_3(%arg0: i32) -> (i32, i32) {
    %c0_i32 = arith.constant 0 : i32
    %c0_i32_0 = arith.constant 0 : i32
    return %arg0, %c0_i32 : i32, i32
  }
}

module attributes {stable_mosaic.version = 11 : i64} {
  func.func @_conv_matmul_kernel(%arg0: i32, %arg1: memref<18x2048xf32, #tpu.memory_space<vmem>>, %arg2: memref<2048x128xf32, #tpu.memory_space<vmem>>, %arg3: memref<1x128xf32, #tpu.memory_space<vmem>>, %arg4: memref<18x128xf32, #tpu.memory_space<vmem>>) attributes {dimension_semantics = [#tpu.dimension_semantics<parallel>], iteration_bounds = array<i64: 1>, scalar_prefetch = 0 : i64, scratch_operands = 0 : i64, tpu.core_type = #tpu.core_type<tc>, window_params = [{transform_indices = @transform_0, window_bounds = array<i64: 18, 2048>}, {pipeline_mode = #tpu.pipeline_mode<synchronous>, transform_indices = @transform_1, window_bounds = array<i64: 2048, 128>}, {pipeline_mode = #tpu.pipeline_mode<synchronous>, transform_indices = @transform_2, window_bounds = array<i64: 1, 128>}, {transform_indices = @transform_3, window_bounds = array<i64: 18, 128>}]} {
    %c0 = arith.constant 0 : index
    %c0_0 = arith.constant 0 : index
    %0 = vector.load %arg1[%c0, %c0_0] : memref<18x2048xf32, #tpu.memory_space<vmem>>, vector<18x2048xf32>
    %c0_1 = arith.constant 0 : index
    %c0_2 = arith.constant 0 : index
    %1 = vector.load %arg2[%c0_1, %c0_2] : memref<2048x128xf32, #tpu.memory_space<vmem>>, vector<2048x128xf32>
    %cst = arith.constant dense<0.000000e+00> : vector<18x128xf32>
    %2 = tpu.matmul %0, %1, %cst {dimension_numbers = #tpu.dot_dimension_numbers<[1], [0], [0], [1], [0, 0, 1, 1], [], []>} : vector<18x2048xf32>, vector<2048x128xf32>, vector<18x128xf32> -> vector<18x128xf32>
    %c0_3 = arith.constant 0 : index
    %c0_4 = arith.constant 0 : index
    %3 = vector.load %arg3[%c0_3, %c0_4] : memref<1x128xf32, #tpu.memory_space<vmem>>, vector<1x128xf32>
    %4 = vector.broadcast %3 : vector<1x128xf32> to vector<18x128xf32>
    %5 = arith.addf %2, %4 : vector<18x128xf32>
    %cst_5 = arith.constant 0.000000e+00 : f32
    %6 = vector.broadcast %cst_5 : f32 to vector<18x128xf32>
    %7 = arith.maximumf %5, %6 : vector<18x128xf32>
    %c0_6 = arith.constant 0 : index
    %c0_7 = arith.constant 0 : index
    %8 = vector.load %arg4[%c0_6, %c0_7] : memref<18x128xf32, #tpu.memory_space<vmem>>, vector<18x128xf32>
    tpu.vector_store %arg4[%c0_6, %c0_7], %7 {strides = array<i32>} : memref<18x128xf32, #tpu.memory_space<vmem>>, vector<18x128xf32>,
    return
  }
  func.func @transform_0(%arg0: i32) -> (i32, i32) {
    %c0_i32 = arith.constant 0 : i32
    %c0_i32_0 = arith.constant 0 : i32
    return %arg0, %c0_i32 : i32, i32
  }
  func.func @transform_1(%arg0: i32) -> (i32, i32) {
    %c0_i32 = arith.constant 0 : i32
    %c0_i32_0 = arith.constant 0 : i32
    %c0_i32_1 = arith.constant 0 : i32
    return %c0_i32, %c0_i32_0 : i32, i32
  }
  func.func @transform_2(%arg0: i32) -> (i32, i32) {
    %c0_i32 = arith.constant 0 : i32
    %c0_i32_0 = arith.constant 0 : i32
    %c0_i32_1 = arith.constant 0 : i32
    return %c0_i32, %c0_i32_0 : i32, i32
  }
  func.func @transform_3(%arg0: i32) -> (i32, i32) {
    %c0_i32 = arith.constant 0 : i32
    %c0_i32_0 = arith.constant 0 : i32
    return %arg0, %c0_i32 : i32, i32
  }
}

module attributes {stable_mosaic.version = 11 : i64} {
  func.func @_conv_matmul_kernel(%arg0: i32, %arg1: memref<2x1152xf32, #tpu.memory_space<vmem>>, %arg2: memref<1152x128xf32, #tpu.memory_space<vmem>>, %arg3: memref<1x128xf32, #tpu.memory_space<vmem>>, %arg4: memref<2x128xf32, #tpu.memory_space<vmem>>) attributes {dimension_semantics = [#tpu.dimension_semantics<parallel>], iteration_bounds = array<i64: 1>, scalar_prefetch = 0 : i64, scratch_operands = 0 : i64, tpu.core_type = #tpu.core_type<tc>, window_params = [{transform_indices = @transform_0, window_bounds = array<i64: 2, 1152>}, {pipeline_mode = #tpu.pipeline_mode<synchronous>, transform_indices = @transform_1, window_bounds = array<i64: 1152, 128>}, {pipeline_mode = #tpu.pipeline_mode<synchronous>, transform_indices = @transform_2, window_bounds = array<i64: 1, 128>}, {transform_indices = @transform_3, window_bounds = array<i64: 2, 128>}]} {
    %c0 = arith.constant 0 : index
    %c0_0 = arith.constant 0 : index
    %0 = vector.load %arg1[%c0, %c0_0] : memref<2x1152xf32, #tpu.memory_space<vmem>>, vector<2x1152xf32>
    %c0_1 = arith.constant 0 : index
    %c0_2 = arith.constant 0 : index
    %1 = vector.load %arg2[%c0_1, %c0_2] : memref<1152x128xf32, #tpu.memory_space<vmem>>, vector<1152x128xf32>
    %cst = arith.constant dense<0.000000e+00> : vector<2x128xf32>
    %2 = tpu.matmul %0, %1, %cst {dimension_numbers = #tpu.dot_dimension_numbers<[1], [0], [0], [1], [0, 0, 1, 1], [], []>} : vector<2x1152xf32>, vector<1152x128xf32>, vector<2x128xf32> -> vector<2x128xf32>
    %c0_3 = arith.constant 0 : index
    %c0_4 = arith.constant 0 : index
    %3 = vector.load %arg3[%c0_3, %c0_4] : memref<1x128xf32, #tpu.memory_space<vmem>>, vector<1x128xf32>
    %4 = vector.broadcast %3 : vector<1x128xf32> to vector<2x128xf32>
    %5 = arith.addf %2, %4 : vector<2x128xf32>
    %cst_5 = arith.constant 0.000000e+00 : f32
    %6 = vector.broadcast %cst_5 : f32 to vector<2x128xf32>
    %7 = arith.maximumf %5, %6 : vector<2x128xf32>
    %c0_6 = arith.constant 0 : index
    %c0_7 = arith.constant 0 : index
    %8 = vector.load %arg4[%c0_6, %c0_7] : memref<2x128xf32, #tpu.memory_space<vmem>>, vector<2x128xf32>
    tpu.vector_store %arg4[%c0_6, %c0_7], %7 {strides = array<i32>} : memref<2x128xf32, #tpu.memory_space<vmem>>, vector<2x128xf32>,
    return
  }
  func.func @transform_0(%arg0: i32) -> (i32, i32) {
    %c0_i32 = arith.constant 0 : i32
    %c0_i32_0 = arith.constant 0 : i32
    return %arg0, %c0_i32 : i32, i32
  }
  func.func @transform_1(%arg0: i32) -> (i32, i32) {
    %c0_i32 = arith.constant 0 : i32
    %c0_i32_0 = arith.constant 0 : i32
    %c0_i32_1 = arith.constant 0 : i32
    return %c0_i32, %c0_i32_0 : i32, i32
  }
  func.func @transform_2(%arg0: i32) -> (i32, i32) {
    %c0_i32 = arith.constant 0 : i32
    %c0_i32_0 = arith.constant 0 : i32
    %c0_i32_1 = arith.constant 0 : i32
    return %c0_i32, %c0_i32_0 : i32, i32
  }
  func.func @transform_3(%arg0: i32) -> (i32, i32) {
    %c0_i32 = arith.constant 0 : i32
    %c0_i32_0 = arith.constant 0 : i32
    return %arg0, %c0_i32 : i32, i32
  }
}

module attributes {stable_mosaic.version = 11 : i64} {
  func.func @_duel_head_kernel(%arg0: memref<2x128xf32, #tpu.memory_space<vmem>>, %arg1: memref<128x256xf32, #tpu.memory_space<vmem>>, %arg2: memref<1x256xf32, #tpu.memory_space<vmem>>, %arg3: memref<256x5xf32, #tpu.memory_space<vmem>>, %arg4: memref<1x5xf32, #tpu.memory_space<vmem>>, %arg5: memref<2x4xf32, #tpu.memory_space<vmem>>) attributes {dimension_semantics = [], scalar_prefetch = 0 : i64, scratch_operands = 0 : i64, tpu.core_type = #tpu.core_type<tc>} {
    %c0 = arith.constant 0 : index
    %c0_0 = arith.constant 0 : index
    %0 = vector.load %arg0[%c0, %c0_0] : memref<2x128xf32, #tpu.memory_space<vmem>>, vector<2x128xf32>
    %c0_1 = arith.constant 0 : index
    %c0_2 = arith.constant 0 : index
    %1 = vector.load %arg1[%c0_1, %c0_2] : memref<128x256xf32, #tpu.memory_space<vmem>>, vector<128x256xf32>
    %cst = arith.constant dense<0.000000e+00> : vector<2x256xf32>
    %2 = tpu.matmul %0, %1, %cst {dimension_numbers = #tpu.dot_dimension_numbers<[1], [0], [0], [1], [0, 0, 1, 1], [], []>} : vector<2x128xf32>, vector<128x256xf32>, vector<2x256xf32> -> vector<2x256xf32>
    %c0_3 = arith.constant 0 : index
    %c0_4 = arith.constant 0 : index
    %3 = vector.load %arg2[%c0_3, %c0_4] : memref<1x256xf32, #tpu.memory_space<vmem>>, vector<1x256xf32>
    %4 = vector.broadcast %3 : vector<1x256xf32> to vector<2x256xf32>
    %5 = arith.addf %2, %4 : vector<2x256xf32>
    %cst_5 = arith.constant 0.000000e+00 : f32
    %6 = vector.broadcast %cst_5 : f32 to vector<2x256xf32>
    %7 = arith.cmpf oge, %5, %6 : vector<2x256xf32>
    %cst_6 = arith.constant 0.00999999977 : f32
    %8 = vector.broadcast %cst_6 : f32 to vector<2x256xf32>
    %9 = arith.mulf %8, %5 : vector<2x256xf32>
    %10 = arith.select %7, %5, %9 : vector<2x256xi1>, vector<2x256xf32>
    %c0_7 = arith.constant 0 : index
    %c0_8 = arith.constant 0 : index
    %11 = vector.load %arg3[%c0_7, %c0_8] : memref<256x5xf32, #tpu.memory_space<vmem>>, vector<256x5xf32>
    %cst_9 = arith.constant dense<0.000000e+00> : vector<2x5xf32>
    %12 = tpu.matmul %10, %11, %cst_9 {dimension_numbers = #tpu.dot_dimension_numbers<[1], [0], [0], [1], [0, 0, 1, 1], [], []>} : vector<2x256xf32>, vector<256x5xf32>, vector<2x5xf32> -> vector<2x5xf32>
    %c0_10 = arith.constant 0 : index
    %c0_11 = arith.constant 0 : index
    %13 = vector.load %arg4[%c0_10, %c0_11] : memref<1x5xf32, #tpu.memory_space<vmem>>, vector<1x5xf32>
    %14 = vector.broadcast %13 : vector<1x5xf32> to vector<2x5xf32>
    %15 = arith.addf %12, %14 : vector<2x5xf32>
    %16 = vector.extract_strided_slice %15 {offsets = [0, 0], sizes = [2, 4], strides = [1, 1]} : vector<2x5xf32> to vector<2x4xf32>
    %17 = vector.extract_strided_slice %15 {offsets = [0, 4], sizes = [2, 1], strides = [1, 1]} : vector<2x5xf32> to vector<2x1xf32>
    %18 = vector.shape_cast %16 : vector<2x4xf32> to vector<1x2x4xf32>
    %cst_12 = arith.constant dense<0.000000e+00> : vector<1xf32>
    %19 = vector.multi_reduction <add>, %18, %cst_12 [1, 2] : vector<1x2x4xf32> to vector<1xf32>
    %20 = vector.shape_cast %19 : vector<1xf32> to vector<1x1x1xf32>
    %21 = vector.extract %20[0, 0, 0] : f32 from vector<1x1x1xf32>
    %cst_13 = arith.constant 8.000000e+00 : f32
    %22 = arith.divf %21, %cst_13 : f32
    %23 = vector.broadcast %22 : f32 to vector<2x4xf32>
    %24 = arith.subf %16, %23 : vector<2x4xf32>
    %25 = vector.broadcast %17 : vector<2x1xf32> to vector<2x4xf32>
    %26 = arith.addf %25, %24 : vector<2x4xf32>
    %c0_14 = arith.constant 0 : index
    %c0_15 = arith.constant 0 : index
    %27 = vector.load %arg5[%c0_14, %c0_15] : memref<2x4xf32, #tpu.memory_space<vmem>>, vector<2x4xf32>
    tpu.vector_store %arg5[%c0_14, %c0_15], %26 {strides = array<i32>} : memref<2x4xf32, #tpu.memory_space<vmem>>, vector<2x4xf32>,
    return
  }
}

</mosaic_0001>

<bundles_post_ra>
// kernel: duel_cnn_forward.4
= control target key start
LH: loop header
LB: loop body
LE: loop exit
PB: predicated region body
PF: predicated region fallthrough
CT: control target
= control target key end

     0   :  { %s562_s1 = inlined_call_operand.vmem [shape: f32[256,128], index: 1, kind: input, shape index: {}]   ;;  %s563_s2 = inlined_call_operand.vmem [shape: f32[1,128], index: 2, kind: input, shape index: {}]   ;;  %s564_s0 = inlined_call_operand.vmem [shape: f32[128,256], index: 0, kind: input, shape index: {}]   ;;  %s565_s3 = inlined_call_operand.vmem [shape: f32[128,128], index: 3, kind: output, shape index: {}]  }
   0x1   :  { %v61_v0 = vld [vmem:[%s562_s1 + $0x78] sm:$0xff]  ;;  %v60_v1 = vld [vmem:[%s562_s1 + $0x70] sm:$0xff]  ;;  %v59_v4 = vld [vmem:[%s562_s1 + $0x68] sm:$0xff] }
   0x2   :  { %v77_v2 = vld [vmem:[%s562_s1 + $0xf8] sm:$0xff]  ;;  %248 = vmatpush.msra.mxu2 %v61_v0  ;;  %v76_v3 = vld [vmem:[%s562_s1 + $0xf0] sm:$0xff]  ;;  %82 = vmatpush.msra.mxu0 %v61_v0  ;;  %v75_v5 = vld [vmem:[%s562_s1 + $0xe8] sm:$0xff] }
   0x3   :  { %264 = vmatpush.msra.mxu3 %v77_v2  ;;  %147 = vmatpush.msra.mxu1 %v77_v2  ;;  %v58_v6 = vld [vmem:[%s562_s1 + $0x60] sm:$0xff]  ;;  %v57_v8 = vld [vmem:[%s562_s1 + $0x58] sm:$0xff]  ;;  %v56_v10 = vld [vmem:[%s562_s1 + $0x50] sm:$0xff] }
   0x4   :  { %249 = vmatpush.msra.mxu2 %v60_v1  ;;  %83 = vmatpush.msra.mxu0 %v60_v1  ;;  %v74_v7 = vld [vmem:[%s562_s1 + $0xe0] sm:$0xff]  ;;  %v73_v9 = vld [vmem:[%s562_s1 + $0xd8] sm:$0xff]  ;;  %v72_v11 = vld [vmem:[%s562_s1 + $0xd0] sm:$0xff] }
   0x5   :  { %265 = vmatpush.msra.mxu3 %v76_v3  ;;  %148 = vmatpush.msra.mxu1 %v76_v3  ;;  %v55_v12 = vld [vmem:[%s562_s1 + $0x48] sm:$0xff]  ;;  %v54_v14 = vld [vmem:[%s562_s1 + $0x40] sm:$0xff]  ;;  %v53_v16 = vld [vmem:[%s562_s1 + $0x38] sm:$0xff] }
   0x6   :  { %250 = vmatpush.msra.mxu2 %v59_v4  ;;  %84 = vmatpush.msra.mxu0 %v59_v4  ;;  %v71_v13 = vld [vmem:[%s562_s1 + $0xc8] sm:$0xff]  ;;  %v70_v15 = vld [vmem:[%s562_s1 + $0xc0] sm:$0xff]  ;;  %v69_v17 = vld [vmem:[%s562_s1 + $0xb8] sm:$0xff] }
   0x7   :  { %266 = vmatpush.msra.mxu3 %v75_v5  ;;  %149 = vmatpush.msra.mxu1 %v75_v5  ;;  %v52_v18 = vld [vmem:[%s562_s1 + $0x30] sm:$0xff]  ;;  %v51_v20 = vld [vmem:[%s562_s1 + $0x28] sm:$0xff]  ;;  %v50_v22 = vld [vmem:[%s562_s1 + $0x20] sm:$0xff] }
   0x8   :  { %251 = vmatpush.msra.mxu2 %v58_v6  ;;  %85 = vmatpush.msra.mxu0 %v58_v6  ;;  %v68_v19 = vld [vmem:[%s562_s1 + $0xb0] sm:$0xff]  ;;  %v67_v21 = vld [vmem:[%s562_s1 + $0xa8] sm:$0xff]  ;;  %v66_v23 = vld [vmem:[%s562_s1 + $0xa0] sm:$0xff] }
   0x9   :  { %267 = vmatpush.msra.mxu3 %v74_v7  ;;  %150 = vmatpush.msra.mxu1 %v74_v7  ;;  %v49_v24 = vld [vmem:[%s562_s1 + $0x18] sm:$0xff]  ;;  %v48_v26 = vld [vmem:[%s562_s1 + $0x10] sm:$0xff]  ;;  %v47_v28 = vld [vmem:[%s562_s1 + $0x8] sm:$0xff] }
   0xa   :  { %252 = vmatpush.msra.mxu2 %v57_v8  ;;  %86 = vmatpush.msra.mxu0 %v57_v8  ;;  %v65_v25 = vld [vmem:[%s562_s1 + $0x98] sm:$0xff]  ;;  %v64_v27 = vld [vmem:[%s562_s1 + $0x90] sm:$0xff]  ;;  %v63_v29 = vld [vmem:[%s562_s1 + $0x88] sm:$0xff] }
   0xb   :  { %268 = vmatpush.msra.mxu3 %v73_v9  ;;  %151 = vmatpush.msra.mxu1 %v73_v9  ;;  %v46_v30 = vld [vmem:[%s562_s1] sm:$0xff]  ;;  %v31_v33 = vld [vmem:[%s564_s0 + $0x88] sm:$0xff]  ;;  %v32_v36 = vld [vmem:[%s564_s0 + $0x90] sm:$0xff] }
   0xc   :  { %253 = vmatpush.msra.mxu2 %v56_v10  ;;  %87 = vmatpush.msra.mxu0 %v56_v10  ;;  %v62_v31 = vld [vmem:[%s562_s1 + $0x80] sm:$0xff]  ;;  %v15_v35 = vld [vmem:[%s564_s0 + $0x8] sm:$0xff]  ;;  %v33_v37 = vld [vmem:[%s564_s0 + $0x98] sm:$0xff] }
   0xd   :  { %269 = vmatpush.msra.mxu3 %v72_v11  ;;  %152 = vmatpush.msra.mxu1 %v72_v11  ;;  %v30_v32 = vld [vmem:[%s564_s0 + $0x80] sm:$0xff]  ;;  %v16_v38 = vld [vmem:[%s564_s0 + $0x10] sm:$0xff]  ;;  %v17_v39 = vld [vmem:[%s564_s0 + $0x18] sm:$0xff] }
   0xe   :  { %254 = vmatpush.msra.mxu2 %v55_v12  ;;  %88 = vmatpush.msra.mxu0 %v55_v12  ;;  %v14_v34 = vld [vmem:[%s564_s0] sm:$0xff]  ;;  %v35_v41 = vld [vmem:[%s564_s0 + $0xa8] sm:$0xff]  ;;  %v36_v44 = vld [vmem:[%s564_s0 + $0xb0] sm:$0xff] }
   0xf   :  { %270 = vmatpush.msra.mxu3 %v71_v13  ;;  %153 = vmatpush.msra.mxu1 %v71_v13  ;;  %v34_v40 = vld [vmem:[%s564_s0 + $0xa0] sm:$0xff]  ;;  %v19_v43 = vld [vmem:[%s564_s0 + $0x28] sm:$0xff]  ;;  %v37_v45 = vld [vmem:[%s564_s0 + $0xb8] sm:$0xff] }
  0x10   :  { %255 = vmatpush.msra.mxu2 %v54_v14  ;;  %89 = vmatpush.msra.mxu0 %v54_v14  ;;  %v18_v42 = vld [vmem:[%s564_s0 + $0x20] sm:$0xff]  ;;  %v20_v46 = vld [vmem:[%s564_s0 + $0x30] sm:$0xff]  ;;  %v21_v47 = vld [vmem:[%s564_s0 + $0x38] sm:$0xff] }
  0x11   :  { %271 = vmatpush.msra.mxu3 %v70_v15  ;;  %154 = vmatpush.msra.mxu1 %v70_v15  ;;  %v38_v48 = vld [vmem:[%s564_s0 + $0xc0] sm:$0xff]  ;;  %v39_v49 = vld [vmem:[%s564_s0 + $0xc8] sm:$0xff]  ;;  %v40_v52 = vld [vmem:[%s564_s0 + $0xd0] sm:$0xff] }
  0x12   :  { %256 = vmatpush.msra.mxu2 %v53_v16  ;;  %90 = vmatpush.msra.mxu0 %v53_v16  ;;  %v22_v50 = vld [vmem:[%s564_s0 + $0x40] sm:$0xff]  ;;  %v23_v51 = vld [vmem:[%s564_s0 + $0x48] sm:$0xff]  ;;  %v41_v53 = vld [vmem:[%s564_s0 + $0xd8] sm:$0xff] }
  0x13   :  { %272 = vmatpush.msra.mxu3 %v69_v17  ;;  %155 = vmatpush.msra.mxu1 %v69_v17  ;;  %v24_v54 = vld [vmem:[%s564_s0 + $0x50] sm:$0xff]  ;;  %v25_v55 = vld [vmem:[%s564_s0 + $0x58] sm:$0xff]  ;;  %v42_v56 = vld [vmem:[%s564_s0 + $0xe0] sm:$0xff] }
  0x14   :  { %257 = vmatpush.msra.mxu2 %v52_v18  ;;  %91 = vmatpush.msra.mxu0 %v52_v18  ;;  %v43_v57 = vld [vmem:[%s564_s0 + $0xe8] sm:$0xff]  ;;  %v26_v58 = vld [vmem:[%s564_s0 + $0x60] sm:$0xff]  ;;  %v44_v60 = vld [vmem:[%s564_s0 + $0xf0] sm:$0xff] }
  0x15   :  { %273 = vmatpush.msra.mxu3 %v68_v19  ;;  %156 = vmatpush.msra.mxu1 %v68_v19  ;;  %v27_v59 = vld [vmem:[%s564_s0 + $0x68] sm:$0xff]  ;;  %v45_v61 = vld [vmem:[%s564_s0 + $0xf8] sm:$0xff]  ;;  %v28_v62 = vld [vmem:[%s564_s0 + $0x70] sm:$0xff] }
  0x16   :  { %258 = vmatpush.msra.mxu2 %v51_v20  ;;  %92 = vmatpush.msra.mxu0 %v51_v20  ;;  %v29_v63 = vld [vmem:[%s564_s0 + $0x78] sm:$0xff]  ;;  %v496_v0 = vld [vmem:[%s563_s2] ss:$0 sm:$0xff] }
  0x17   :  { %274 = vmatpush.msra.mxu3 %v67_v21  ;;  %157 = vmatpush.msra.mxu1 %v67_v21 }
  0x18   :  { %259 = vmatpush.msra.mxu2 %v50_v22  ;;  %93 = vmatpush.msra.mxu0 %v50_v22 }
  0x19   :  { %275 = vmatpush.msra.mxu3 %v66_v23  ;;  %158 = vmatpush.msra.mxu1 %v66_v23 }
  0x1a   :  { %260 = vmatpush.msra.mxu2 %v49_v24  ;;  %94 = vmatpush.msra.mxu0 %v49_v24 }
  0x1b   :  { %276 = vmatpush.msra.mxu3 %v65_v25  ;;  %159 = vmatpush.msra.mxu1 %v65_v25 }
  0x1c   :  { %261 = vmatpush.msra.mxu2 %v48_v26  ;;  %95 = vmatpush.msra.mxu0 %v48_v26 }
  0x1d   :  { %277 = vmatpush.msra.mxu3 %v64_v27  ;;  %160 = vmatpush.msra.mxu1 %v64_v27 }
  0x1e   :  { %262 = vmatpush.msra.mxu2 %v47_v28  ;;  %96 = vmatpush.msra.mxu0 %v47_v28 }
  0x1f   :  { %278 = vmatpush.msra.mxu3 %v63_v29  ;;  %161 = vmatpush.msra.mxu1 %v63_v29 }
  0x20   :  { %263 = vmatpush.msra.mxu2 %v46_v30  ;;  %97 = vmatpush.msra.mxu0 %v46_v30 }
  0x21   :  { %279 = vmatpush.msra.mxu3 %v62_v31  ;;  %122 = vmatmul.f32.vlgmr.msra.gmra.mxu2 %v30_v32 }
  0x22   :  { %187 = vmatmul.f32.vlgmr.msra.gmra.mxu3 %v31_v33  ;;  %162 = vmatpush.msra.mxu1 %v62_v31 }
  0x23   :  { %98 = vmatmul.f32.vlgmr.msra.gmra.mxu0 %v14_v34  ;;  %163 = vmatmul.f32.vlgmr.msra.gmra.mxu1 %v15_v35 }
  0x29   :  { %125 = vmatmul.f32.gmra.mxu2 %v32_v36 }
  0x2a   :  { %190 = vmatmul.f32.gmra.mxu3 %v33_v37 }
  0x2b   :  { %101 = vmatmul.f32.gmra.mxu0 %v16_v38  ;;  %166 = vmatmul.f32.gmra.mxu1 %v17_v39 }
  0x31   :  { %128 = vmatmul.f32.gmra.mxu2 %v34_v40 }
  0x32   :  { %193 = vmatmul.f32.gmra.mxu3 %v35_v41 }
  0x33   :  { %104 = vmatmul.f32.gmra.mxu0 %v18_v42  ;;  %169 = vmatmul.f32.gmra.mxu1 %v19_v43 }
  0x39   :  { %131 = vmatmul.f32.gmra.mxu2 %v36_v44 }
  0x3a   :  { %196 = vmatmul.f32.gmra.mxu3 %v37_v45 }
  0x3b   :  { %107 = vmatmul.f32.gmra.mxu0 %v20_v46  ;;  %172 = vmatmul.f32.gmra.mxu1 %v21_v47 }
  0x41   :  { %134 = vmatmul.f32.gmra.mxu2 %v38_v48 }
  0x42   :  { %199 = vmatmul.f32.gmra.mxu3 %v39_v49 }
  0x43   :  { %110 = vmatmul.f32.gmra.mxu0 %v22_v50  ;;  %175 = vmatmul.f32.gmra.mxu1 %v23_v51 }
  0x49   :  { %137 = vmatmul.f32.gmra.mxu2 %v40_v52 }
  0x4a   :  { %202 = vmatmul.f32.gmra.mxu3 %v41_v53 }
  0x4b   :  { %113 = vmatmul.f32.gmra.mxu0 %v24_v54  ;;  %178 = vmatmul.f32.gmra.mxu1 %v25_v55 }
  0x51   :  { %140 = vmatmul.f32.gmra.mxu2 %v42_v56 }
  0x52   :  { %205 = vmatmul.f32.gmra.mxu3 %v43_v57 }
  0x53   :  { %116 = vmatmul.f32.gmra.mxu0 %v26_v58  ;;  %181 = vmatmul.f32.gmra.mxu1 %v27_v59 }
  0x59   :  { %143 = vmatmul.f32.gmra.mxu2 %v44_v60 }
  0x5a   :  { %208 = vmatmul.f32.gmra.mxu3 %v45_v61 }
  0x5b   :  { %119 = vmatmul.f32.gmra.mxu0 %v28_v62  ;;  %184 = vmatmul.f32.gmra.mxu1 %v29_v63 }
  0xa0   :  { %v99_v1 = vpop.f32.mrf.mxu0  ;;  %v164_v2 = vpop.f32.mrf.mxu1 }
  0xa1   :  { %v100_v3 = vadd.f32 %v496_v0, %v99_v1 }
  0xa3   :  { %v165_v4 = vadd.f32 %v164_v2, %v100_v3 }
  0xa4   :  { %v123_v5 = vpop.f32.mrf.mxu2 }
  0xa5   :  { %v188_v6 = vpop.f32.mrf.mxu3  ;;  %v124_v7 = vadd.f32 %v496_v0, %v123_v5  ;;  %v212_v8 = vmax.f32 %v165_v4, 0.0 }
  0xa7   :  { %228 = vst [vmem:[%s565_s3] sm:$0xff] %v212_v8  ;;  %v189_v9 = vadd.f32 %v188_v6, %v124_v7 }
  0xa8   :  { %v102_v10 = vpop.f32.mrf.mxu0  ;;  %v167_v11 = vpop.f32.mrf.mxu1 }
  0xa9   :  { %v220_v12 = vmax.f32 %v189_v9, 0.0  ;;  %v103_v13 = vadd.f32 %v496_v0, %v102_v10 }
  0xab   :  { %236 = vst [vmem:[%s565_s3 + $0x40] sm:$0xff] %v220_v12  ;;  %v168_v14 = vadd.f32 %v167_v11, %v103_v13 }
  0xac   :  { %v126_v15 = vpop.f32.mrf.mxu2 }
  0xad   :  { %v191_v16 = vpop.f32.mrf.mxu3  ;;  %v127_v17 = vadd.f32 %v496_v0, %v126_v15  ;;  %v213_v18 = vmax.f32 %v168_v14, 0.0 }
  0xaf   :  { %229 = vst [vmem:[%s565_s3 + $0x8] sm:$0xff] %v213_v18  ;;  %v192_v19 = vadd.f32 %v191_v16, %v127_v17 }
  0xb0   :  { %v105_v20 = vpop.f32.mrf.mxu0  ;;  %v170_v21 = vpop.f32.mrf.mxu1 }
  0xb1   :  { %v221_v22 = vmax.f32 %v192_v19, 0.0  ;;  %v106_v23 = vadd.f32 %v496_v0, %v105_v20 }
  0xb3   :  { %237 = vst [vmem:[%s565_s3 + $0x48] sm:$0xff] %v221_v22  ;;  %v171_v24 = vadd.f32 %v170_v21, %v106_v23 }
  0xb4   :  { %v129_v25 = vpop.f32.mrf.mxu2 }
  0xb5   :  { %v194_v26 = vpop.f32.mrf.mxu3  ;;  %v130_v27 = vadd.f32 %v496_v0, %v129_v25  ;;  %v214_v28 = vmax.f32 %v171_v24, 0.0 }
  0xb7   :  { %230 = vst [vmem:[%s565_s3 + $0x10] sm:$0xff] %v214_v28  ;;  %v195_v29 = vadd.f32 %v194_v26, %v130_v27 }
  0xb8   :  { %v108_v30 = vpop.f32.mrf.mxu0  ;;  %v173_v31 = vpop.f32.mrf.mxu1 }
  0xb9   :  { %v222_v32 = vmax.f32 %v195_v29, 0.0  ;;  %v109_v33 = vadd.f32 %v496_v0, %v108_v30 }
  0xbb   :  { %238 = vst [vmem:[%s565_s3 + $0x50] sm:$0xff] %v222_v32  ;;  %v174_v34 = vadd.f32 %v173_v31, %v109_v33 }
  0xbc   :  { %v132_v35 = vpop.f32.mrf.mxu2 }
  0xbd   :  { %v197_v36 = vpop.f32.mrf.mxu3  ;;  %v133_v37 = vadd.f32 %v496_v0, %v132_v35  ;;  %v215_v38 = vmax.f32 %v174_v34, 0.0 }
  0xbf   :  { %231 = vst [vmem:[%s565_s3 + $0x18] sm:$0xff] %v215_v38  ;;  %v198_v39 = vadd.f32 %v197_v36, %v133_v37 }
  0xc0   :  { %v111_v40 = vpop.f32.mrf.mxu0  ;;  %v176_v41 = vpop.f32.mrf.mxu1 }
  0xc1   :  { %v223_v42 = vmax.f32 %v198_v39, 0.0  ;;  %v112_v43 = vadd.f32 %v496_v0, %v111_v40 }
  0xc3   :  { %239 = vst [vmem:[%s565_s3 + $0x58] sm:$0xff] %v223_v42  ;;  %v177_v44 = vadd.f32 %v176_v41, %v112_v43 }
  0xc4   :  { %v135_v45 = vpop.f32.mrf.mxu2 }
  0xc5   :  { %v200_v46 = vpop.f32.mrf.mxu3  ;;  %v136_v47 = vadd.f32 %v496_v0, %v135_v45  ;;  %v216_v48 = vmax.f32 %v177_v44, 0.0 }
  0xc7   :  { %232 = vst [vmem:[%s565_s3 + $0x20] sm:$0xff] %v216_v48  ;;  %v201_v49 = vadd.f32 %v200_v46, %v136_v47 }
  0xc8   :  { %v114_v50 = vpop.f32.mrf.mxu0  ;;  %v179_v51 = vpop.f32.mrf.mxu1 }
  0xc9   :  { %v224_v52 = vmax.f32 %v201_v49, 0.0  ;;  %v115_v53 = vadd.f32 %v496_v0, %v114_v50 }
  0xcb   :  { %240 = vst [vmem:[%s565_s3 + $0x60] sm:$0xff] %v224_v52  ;;  %v180_v54 = vadd.f32 %v179_v51, %v115_v53 }
  0xcc   :  { %v138_v55 = vpop.f32.mrf.mxu2 }
  0xcd   :  { %v203_v56 = vpop.f32.mrf.mxu3  ;;  %v139_v57 = vadd.f32 %v496_v0, %v138_v55  ;;  %v217_v58 = vmax.f32 %v180_v54, 0.0 }
  0xcf   :  { %233 = vst [vmem:[%s565_s3 + $0x28] sm:$0xff] %v217_v58  ;;  %v204_v59 = vadd.f32 %v203_v56, %v139_v57 }
  0xd0   :  { %v117_v60 = vpop.f32.mrf.mxu0  ;;  %v182_v61 = vpop.f32.mrf.mxu1 }
  0xd1   :  { %v225_v62 = vmax.f32 %v204_v59, 0.0  ;;  %v118_v63 = vadd.f32 %v496_v0, %v117_v60 }
  0xd3   :  { %241 = vst [vmem:[%s565_s3 + $0x68] sm:$0xff] %v225_v62  ;;  %v183_v1 = vadd.f32 %v182_v61, %v118_v63 }
  0xd4   :  { %v141_v2 = vpop.f32.mrf.mxu2 }
  0xd5   :  { %v206_v3 = vpop.f32.mrf.mxu3  ;;  %v142_v4 = vadd.f32 %v496_v0, %v141_v2  ;;  %v218_v5 = vmax.f32 %v183_v1, 0.0 }
  0xd7   :  { %234 = vst [vmem:[%s565_s3 + $0x30] sm:$0xff] %v218_v5  ;;  %v207_v6 = vadd.f32 %v206_v3, %v142_v4 }
  0xd8   :  { %v120_v7 = vpop.f32.mrf.mxu0  ;;  %v185_v8 = vpop.f32.mrf.mxu1 }
  0xd9   :  { %v226_v9 = vmax.f32 %v207_v6, 0.0  ;;  %v121_v10 = vadd.f32 %v496_v0, %v120_v7 }
  0xdb   :  { %242 = vst [vmem:[%s565_s3 + $0x70] sm:$0xff] %v226_v9  ;;  %v186_v11 = vadd.f32 %v185_v8, %v121_v10 }
  0xdc   :  { %v144_v12 = vpop.f32.mrf.mxu2 }
  0xdd   :  { %v209_v13 = vpop.f32.mrf.mxu3  ;;  %v145_v14 = vadd.f32 %v496_v0, %v144_v12  ;;  %v219_v15 = vmax.f32 %v186_v11, 0.0 }
  0xdf   :  { %235 = vst [vmem:[%s565_s3 + $0x38] sm:$0xff] %v219_v15  ;;  %v210_v16 = vadd.f32 %v209_v13, %v145_v14 }
  0xe1   :  { %v227_v17 = vmax.f32 %v210_v16, 0.0 }
  0xe3   :  { %243 = vst [vmem:[%s565_s3 + $0x78] sm:$0xff] %v227_v17 }

// kernel: duel_cnn_forward.6
= control target key start
LH: loop header
LB: loop body
LE: loop exit
PB: predicated region body
PF: predicated region fallthrough
CT: control target
= control target key end

     0   :  { %s847_s1 = inlined_call_operand.vmem [shape: f32[1152,128], index: 1, kind: input, shape index: {}]   ;;  %s848_s0 = inlined_call_operand.vmem [shape: f32[2,1152], index: 0, kind: input, shape index: {}]   ;;  %s849_s2 = inlined_call_operand.vmem [shape: f32[1,128], index: 2, kind: input, shape index: {}]   ;;  %s850_s3 = inlined_call_operand.vmem [shape: f32[2,128], index: 3, kind: output, shape index: {}]  }
   0x1   :  { %v32_v0 = vld [vmem:[%s847_s1 + $0x78] sm:$0xff]  ;;  %v31_v1 = vld [vmem:[%s847_s1 + $0x70] sm:$0xff]  ;;  %v30_v3 = vld [vmem:[%s847_s1 + $0x68] sm:$0xff] }
   0x2   :  { %190 = vmatpush.msra.mxu0 %v32_v0  ;;  %v64_v2 = vld [vmem:[%s847_s1 + $0x178] sm:$0xff]  ;;  %v63_v4 = vld [vmem:[%s847_s1 + $0x170] sm:$0xff]  ;;  %v62_v7 = vld [vmem:[%s847_s1 + $0x168] sm:$0xff] }
   0x3   :  { %230 = vmatpush.msra.mxu2 %v64_v2  ;;  %v80_v5 = vld [vmem:[%s847_s1 + $0x1f8] sm:$0xff]  ;;  %v79_v8 = vld [vmem:[%s847_s1 + $0x1f0] sm:$0xff]  ;;  %v29_v9 = vld [vmem:[%s847_s1 + $0x60] sm:$0xff] }
   0x4   :  { %191 = vmatpush.msra.mxu0 %v31_v1  ;;  %250 = vmatpush.msra.mxu3 %v80_v5  ;;  %v48_v6 = vld [vmem:[%s847_s1 + $0xf8] sm:$0xff]  ;;  %v47_v10 = vld [vmem:[%s847_s1 + $0xf0] sm:$0xff]  ;;  %v61_v11 = vld [vmem:[%s847_s1 + $0x160] sm:$0xff] }
   0x5   :  { %231 = vmatpush.msra.mxu2 %v63_v4  ;;  %210 = vmatpush.msra.mxu1 %v48_v6  ;;  %v78_v12 = vld [vmem:[%s847_s1 + $0x1e8] sm:$0xff]  ;;  %v28_v14 = vld [vmem:[%s847_s1 + $0x58] sm:$0xff]  ;;  %v77_v15 = vld [vmem:[%s847_s1 + $0x1e0] sm:$0xff] }
   0x6   :  { %192 = vmatpush.msra.mxu0 %v30_v3  ;;  %251 = vmatpush.msra.mxu3 %v79_v8  ;;  %v46_v13 = vld [vmem:[%s847_s1 + $0xe8] sm:$0xff]  ;;  %v60_v16 = vld [vmem:[%s847_s1 + $0x158] sm:$0xff]  ;;  %v45_v17 = vld [vmem:[%s847_s1 + $0xe0] sm:$0xff] }
   0x7   :  { %232 = vmatpush.msra.mxu2 %v62_v7  ;;  %211 = vmatpush.msra.mxu1 %v47_v10  ;;  %v27_v18 = vld [vmem:[%s847_s1 + $0x50] sm:$0xff]  ;;  %v76_v19 = vld [vmem:[%s847_s1 + $0x1d8] sm:$0xff]  ;;  %v26_v22 = vld [vmem:[%s847_s1 + $0x48] sm:$0xff] }
   0x8   :  { %193 = vmatpush.msra.mxu0 %v29_v9  ;;  %252 = vmatpush.msra.mxu3 %v78_v12  ;;  %v59_v20 = vld [vmem:[%s847_s1 + $0x150] sm:$0xff]  ;;  %v44_v21 = vld [vmem:[%s847_s1 + $0xd8] sm:$0xff]  ;;  %v58_v24 = vld [vmem:[%s847_s1 + $0x148] sm:$0xff] }
   0x9   :  { %233 = vmatpush.msra.mxu2 %v61_v11  ;;  %212 = vmatpush.msra.mxu1 %v46_v13  ;;  %v75_v23 = vld [vmem:[%s847_s1 + $0x1d0] sm:$0xff]  ;;  %v25_v26 = vld [vmem:[%s847_s1 + $0x40] sm:$0xff]  ;;  %v74_v27 = vld [vmem:[%s847_s1 + $0x1c8] sm:$0xff] }
   0xa   :  { %194 = vmatpush.msra.mxu0 %v28_v14  ;;  %253 = vmatpush.msra.mxu3 %v77_v15  ;;  %v43_v25 = vld [vmem:[%s847_s1 + $0xd0] sm:$0xff]  ;;  %v57_v28 = vld [vmem:[%s847_s1 + $0x140] sm:$0xff]  ;;  %v42_v29 = vld [vmem:[%s847_s1 + $0xc8] sm:$0xff] }
   0xb   :  { %234 = vmatpush.msra.mxu2 %v60_v16  ;;  %213 = vmatpush.msra.mxu1 %v45_v17  ;;  %v24_v30 = vld [vmem:[%s847_s1 + $0x38] sm:$0xff]  ;;  %v73_v31 = vld [vmem:[%s847_s1 + $0x1c0] sm:$0xff]  ;;  %v23_v34 = vld [vmem:[%s847_s1 + $0x30] sm:$0xff] }
   0xc   :  { %195 = vmatpush.msra.mxu0 %v27_v18  ;;  %254 = vmatpush.msra.mxu3 %v76_v19  ;;  %v56_v32 = vld [vmem:[%s847_s1 + $0x138] sm:$0xff]  ;;  %v41_v33 = vld [vmem:[%s847_s1 + $0xc0] sm:$0xff]  ;;  %v55_v36 = vld [vmem:[%s847_s1 + $0x130] sm:$0xff] }
   0xd   :  { %235 = vmatpush.msra.mxu2 %v59_v20  ;;  %214 = vmatpush.msra.mxu1 %v44_v21  ;;  %v72_v35 = vld [vmem:[%s847_s1 + $0x1b8] sm:$0xff]  ;;  %v22_v38 = vld [vmem:[%s847_s1 + $0x28] sm:$0xff]  ;;  %v71_v39 = vld [vmem:[%s847_s1 + $0x1b0] sm:$0xff] }
   0xe   :  { %196 = vmatpush.msra.mxu0 %v26_v22  ;;  %255 = vmatpush.msra.mxu3 %v75_v23  ;;  %v40_v37 = vld [vmem:[%s847_s1 + $0xb8] sm:$0xff]  ;;  %v54_v40 = vld [vmem:[%s847_s1 + $0x128] sm:$0xff]  ;;  %v39_v41 = vld [vmem:[%s847_s1 + $0xb0] sm:$0xff] }
   0xf   :  { %236 = vmatpush.msra.mxu2 %v58_v24  ;;  %215 = vmatpush.msra.mxu1 %v43_v25  ;;  %v21_v42 = vld [vmem:[%s847_s1 + $0x20] sm:$0xff]  ;;  %v70_v43 = vld [vmem:[%s847_s1 + $0x1a8] sm:$0xff]  ;;  %v20_v46 = vld [vmem:[%s847_s1 + $0x18] sm:$0xff] }
  0x10   :  { %197 = vmatpush.msra.mxu0 %v25_v26  ;;  %256 = vmatpush.msra.mxu3 %v74_v27  ;;  %v53_v44 = vld [vmem:[%s847_s1 + $0x120] sm:$0xff]  ;;  %v38_v45 = vld [vmem:[%s847_s1 + $0xa8] sm:$0xff]  ;;  %v52_v48 = vld [vmem:[%s847_s1 + $0x118] sm:$0xff] }
  0x11   :  { %237 = vmatpush.msra.mxu2 %v57_v28  ;;  %216 = vmatpush.msra.mxu1 %v42_v29  ;;  %v69_v47 = vld [vmem:[%s847_s1 + $0x1a0] sm:$0xff]  ;;  %v19_v50 = vld [vmem:[%s847_s1 + $0x10] sm:$0xff]  ;;  %v68_v51 = vld [vmem:[%s847_s1 + $0x198] sm:$0xff] }
  0x12   :  { %198 = vmatpush.msra.mxu0 %v24_v30  ;;  %257 = vmatpush.msra.mxu3 %v73_v31  ;;  %v37_v49 = vld [vmem:[%s847_s1 + $0xa0] sm:$0xff]  ;;  %v51_v52 = vld [vmem:[%s847_s1 + $0x110] sm:$0xff]  ;;  %v36_v53 = vld [vmem:[%s847_s1 + $0x98] sm:$0xff] }
  0x13   :  { %238 = vmatpush.msra.mxu2 %v56_v32  ;;  %217 = vmatpush.msra.mxu1 %v41_v33  ;;  %v18_v54 = vld [vmem:[%s847_s1 + $0x8] sm:$0xff]  ;;  %v67_v55 = vld [vmem:[%s847_s1 + $0x190] sm:$0xff]  ;;  %v17_v58 = vld [vmem:[%s847_s1] sm:$0xff] }
  0x14   :  { %199 = vmatpush.msra.mxu0 %v23_v34  ;;  %258 = vmatpush.msra.mxu3 %v72_v35  ;;  %v50_v56 = vld [vmem:[%s847_s1 + $0x108] sm:$0xff]  ;;  %v35_v57 = vld [vmem:[%s847_s1 + $0x90] sm:$0xff]  ;;  %v96_v60 = vld [vmem:[%s847_s1 + $0x278] sm:$0xff] }
  0x15   :  { %239 = vmatpush.msra.mxu2 %v55_v36  ;;  %218 = vmatpush.msra.mxu1 %v40_v37  ;;  %v66_v59 = vld [vmem:[%s847_s1 + $0x188] sm:$0xff]  ;;  %v49_v61 = vld [vmem:[%s847_s1 + $0x100] sm:$0xff]  ;;  %v128_v62 = vld [vmem:[%s847_s1 + $0x378] sm:$0xff] }
  0x16   :  { %200 = vmatpush.msra.mxu0 %v22_v38  ;;  %259 = vmatpush.msra.mxu3 %v71_v39  ;;  %v34_v63 = vld [vmem:[%s847_s1 + $0x88] sm:$0xff]  ;;  %v95_v0 = vld [vmem:[%s847_s1 + $0x270] sm:$0xff]  ;;  %v65_v1 = vld [vmem:[%s847_s1 + $0x180] sm:$0xff] }
  0x17   :  { %240 = vmatpush.msra.mxu2 %v54_v40  ;;  %219 = vmatpush.msra.mxu1 %v39_v41  ;;  %v127_v2 = vld [vmem:[%s847_s1 + $0x370] sm:$0xff]  ;;  %v144_v3 = vld [vmem:[%s847_s1 + $0x3f8] sm:$0xff]  ;;  %v94_v4 = vld [vmem:[%s847_s1 + $0x268] sm:$0xff] }
  0x18   :  { %201 = vmatpush.msra.mxu0 %v21_v42  ;;  %260 = vmatpush.msra.mxu3 %v70_v43  ;;  %v33_v5 = vld [vmem:[%s847_s1 + $0x80] sm:$0xff]  ;;  %v112_v6 = vld [vmem:[%s847_s1 + $0x2f8] sm:$0xff]  ;;  %v126_v7 = vld [vmem:[%s847_s1 + $0x368] sm:$0xff] }
  0x19   :  { %241 = vmatpush.msra.mxu2 %v53_v44  ;;  %220 = vmatpush.msra.mxu1 %v38_v45  ;;  %v93_v8 = vld [vmem:[%s847_s1 + $0x260] sm:$0xff]  ;;  %v143_v9 = vld [vmem:[%s847_s1 + $0x3f0] sm:$0xff]  ;;  %v92_v12 = vld [vmem:[%s847_s1 + $0x258] sm:$0xff] }
  0x1a   :  { %202 = vmatpush.msra.mxu0 %v20_v46  ;;  %261 = vmatpush.msra.mxu3 %v69_v47  ;;  %v111_v10 = vld [vmem:[%s847_s1 + $0x2f0] sm:$0xff]  ;;  %v125_v11 = vld [vmem:[%s847_s1 + $0x360] sm:$0xff]  ;;  %v142_v13 = vld [vmem:[%s847_s1 + $0x3e8] sm:$0xff] }
  0x1b   :  { %242 = vmatpush.msra.mxu2 %v52_v48  ;;  %221 = vmatpush.msra.mxu1 %v37_v49  ;;  %v14_v14 = vld [vmem:[%s848_s0] sm:$0xff]  ;;  %v110_v15 = vld [vmem:[%s847_s1 + $0x2e8] sm:$0xff]  ;;  %v124_v16 = vld [vmem:[%s847_s1 + $0x358] sm:$0xff] }
  0x1c   :  { %203 = vmatpush.msra.mxu0 %v19_v50  ;;  %262 = vmatpush.msra.mxu3 %v68_v51  ;;  %168 = vst [vmem:[#allocation1] ss:$4 sm:$0xff] %v14_v14  ;;  %v91_v17 = vld [vmem:[%s847_s1 + $0x250] sm:$0xff]  ;;  %v141_v18 = vld [vmem:[%s847_s1 + $0x3e0] sm:$0xff]  ;;  %v90_v19 = vld [vmem:[%s847_s1 + $0x248] sm:$0xff] }
  0x1d   :  { %243 = vmatpush.msra.mxu2 %v51_v52  ;;  %222 = vmatpush.msra.mxu1 %v36_v53  ;;  %v109_v20 = vld [vmem:[%s847_s1 + $0x2e0] sm:$0xff]  ;;  %v123_v21 = vld [vmem:[%s847_s1 + $0x350] sm:$0xff]  ;;  %v140_v23 = vld [vmem:[%s847_s1 + $0x3d8] sm:$0xff] }
  0x1e   :  { %204 = vmatpush.msra.mxu0 %v18_v54  ;;  %263 = vmatpush.msra.mxu3 %v67_v55  ;;  %v89_v22 = vld [vmem:[%s847_s1 + $0x240] sm:$0xff]  ;;  %v108_v24 = vld [vmem:[%s847_s1 + $0x2d8] sm:$0xff]  ;;  %v122_v25 = vld [vmem:[%s847_s1 + $0x348] sm:$0xff] }
  0x1f   :  { %244 = vmatpush.msra.mxu2 %v50_v56  ;;  %223 = vmatpush.msra.mxu1 %v35_v57  ;;  %v139_v26 = vld [vmem:[%s847_s1 + $0x3d0] sm:$0xff]  ;;  %v88_v28 = vld [vmem:[%s847_s1 + $0x238] sm:$0xff]  ;;  %v121_v29 = vld [vmem:[%s847_s1 + $0x340] sm:$0xff] }
  0x20   :  { %205 = vmatpush.msra.mxu0 %v17_v58  ;;  %264 = vmatpush.msra.mxu3 %v66_v59  ;;  %v107_v27 = vld [vmem:[%s847_s1 + $0x2d0] sm:$0xff]  ;;  %v138_v30 = vld [vmem:[%s847_s1 + $0x3c8] sm:$0xff]  ;;  %v120_v33 = vld [vmem:[%s847_s1 + $0x338] sm:$0xff] }
  0x21   :  { %245 = vmatpush.msra.mxu2 %v49_v61  ;;  %224 = vmatpush.msra.mxu1 %v34_v63  ;;  %v15_v31 = vld [vmem:[%s848_s0 + $0x8] sm:$0xff]  ;;  %v16_v34 = vld [vmem:[%s848_s0 + $0x10] sm:$0x3]  ;;  %v137_v40 = vld [vmem:[%s847_s1 + $0x3c0] sm:$0xff] }
  0x22   :  { %270 = vmatpush.msrb.mxu0 %v96_v60  ;;  %265 = vmatpush.msra.mxu3 %v65_v1  ;;  %v106_v32 = vld [vmem:[%s847_s1 + $0x2c8] sm:$0xff]  ;;  %170 = vst [vmem:[#allocation1 + $0x20] ss:$4 sm:$0xff] %v15_v31  ;;  %v87_v39 = vld [vmem:[%s847_s1 + $0x230] sm:$0xff]  ;;  %v105_v41 = vld [vmem:[%s847_s1 + $0x2c0] sm:$0xff] }
  0x23   :  { %310 = vmatpush.msrb.mxu2 %v128_v62  ;;  %225 = vmatpush.msra.mxu1 %v33_v5  ;;  %v173_v35 = vld.sshfl [vmem:[#allocation1 + $0x10] sm:$0xff pattern:$0x73625140]  ;;  %v171_v36 = vld.sshfl [vmem:[#allocation1] sm:$0xff pattern:$0x73625140] }
  0x24   :  { %271 = vmatpush.msrb.mxu0 %v95_v0  ;;  %330 = vmatpush.msrb.mxu3 %v144_v3  ;;  %v174_v37 = vld.sshfl [vmem:[#allocation1 + $0x18] sm:$0xff pattern:$0x73625140]  ;;  %v694_v38 = vld.sshfl [vmem:[#allocation1 + $0x8] sm:$0xff pattern:$0x73625140] }
  0x25   :  { %311 = vmatpush.msrb.mxu2 %v127_v2  ;;  %290 = vmatpush.msrb.mxu1 %v112_v6  ;;  %179 = vst [vmem:[#allocation1] ss:$4 sm:$0xff] %v16_v34  ;;  %v119_v42 = vld [vmem:[%s847_s1 + $0x330] sm:$0xff]  ;;  %v86_v43 = vld [vmem:[%s847_s1 + $0x228] sm:$0xff]  ;;  %v136_v44 = vld [vmem:[%s847_s1 + $0x3b8] sm:$0xff] }
  0x26   :  { %272 = vmatpush.msrb.mxu0 %v94_v4  ;;  %331 = vmatpush.msrb.mxu3 %v143_v9  ;;  %v104_v45 = vld [vmem:[%s847_s1 + $0x2b8] sm:$0xff]  ;;  %v118_v46 = vld [vmem:[%s847_s1 + $0x328] sm:$0xff]  ;;  %v85_v47 = vld [vmem:[%s847_s1 + $0x220] sm:$0xff] }
  0x27   :  { %312 = vmatpush.msrb.mxu2 %v126_v7  ;;  %291 = vmatpush.msrb.mxu1 %v111_v10  ;;  %v135_v48 = vld [vmem:[%s847_s1 + $0x3b0] sm:$0xff]  ;;  %v117_v50 = vld [vmem:[%s847_s1 + $0x320] sm:$0xff]  ;;  %v84_v51 = vld [vmem:[%s847_s1 + $0x218] sm:$0xff] }
  0x28   :  { %273 = vmatpush.msrb.mxu0 %v93_v8  ;;  %332 = vmatpush.msrb.mxu3 %v142_v13  ;;  %v103_v49 = vld [vmem:[%s847_s1 + $0x2b0] sm:$0xff]  ;;  %v134_v52 = vld [vmem:[%s847_s1 + $0x3a8] sm:$0xff]  ;;  %v116_v55 = vld [vmem:[%s847_s1 + $0x318] sm:$0xff] }
  0x29   :  { %313 = vmatpush.msrb.mxu2 %v125_v11  ;;  %292 = vmatpush.msrb.mxu1 %v110_v15  ;;  %v102_v53 = vld [vmem:[%s847_s1 + $0x2a8] sm:$0xff]  ;;  %v83_v54 = vld [vmem:[%s847_s1 + $0x210] sm:$0xff]  ;;  %v133_v56 = vld [vmem:[%s847_s1 + $0x3a0] sm:$0xff] }
  0x2a   :  { %274 = vmatpush.msrb.mxu0 %v92_v12  ;;  %333 = vmatpush.msrb.mxu3 %v141_v18  ;;  %v82_v57 = vld [vmem:[%s847_s1 + $0x208] sm:$0xff]  ;;  %v101_v58 = vld [vmem:[%s847_s1 + $0x2a0] sm:$0xff]  ;;  %v115_v59 = vld [vmem:[%s847_s1 + $0x310] sm:$0xff] }
  0x2b   :  { %314 = vmatpush.msrb.mxu2 %v124_v16  ;;  %293 = vmatpush.msrb.mxu1 %v109_v20  ;;  %v81_v60 = vld [vmem:[%s847_s1 + $0x200] sm:$0xff]  ;;  %v132_v61 = vld [vmem:[%s847_s1 + $0x398] sm:$0xff]  ;;  %v114_v0 = vld [vmem:[%s847_s1 + $0x308] sm:$0xff] }
  0x2c   :  { %275 = vmatpush.msrb.mxu0 %v91_v17  ;;  %334 = vmatpush.msrb.mxu3 %v140_v23  ;;  %v160_v62 = vld [vmem:[%s847_s1 + $0x478] sm:$0xff]  ;;  %v159_v1 = vld [vmem:[%s847_s1 + $0x470] sm:$0xff]  ;;  %v113_v4 = vld [vmem:[%s847_s1 + $0x300] sm:$0xff] }
  0x2d   :  { %315 = vmatpush.msrb.mxu2 %v123_v21  ;;  %294 = vmatpush.msrb.mxu1 %v108_v24  ;;  %v100_v63 = vld [vmem:[%s847_s1 + $0x298] sm:$0xff]  ;;  %v131_v2 = vld [vmem:[%s847_s1 + $0x390] sm:$0xff]  ;;  %v158_v5 = vld [vmem:[%s847_s1 + $0x468] sm:$0xff] }
  0x2e   :  { %276 = vmatpush.msrb.mxu0 %v90_v19  ;;  %335 = vmatpush.msrb.mxu3 %v139_v26  ;;  %v99_v3 = vld [vmem:[%s847_s1 + $0x290] sm:$0xff]  ;;  %v130_v6 = vld [vmem:[%s847_s1 + $0x388] sm:$0xff]  ;;  %v157_v9 = vld [vmem:[%s847_s1 + $0x460] sm:$0xff] }
  0x2f   :  { %316 = vmatpush.msrb.mxu2 %v122_v25  ;;  %295 = vmatpush.msrb.mxu1 %v107_v27  ;;  %v177_v7 = vld.sshfl [vmem:[#allocation1 + $0x30] sm:$0xff pattern:$0x73625140]  ;;  %v98_v8 = vld [vmem:[%s847_s1 + $0x288] sm:$0xff]  ;;  %v129_v10 = vld [vmem:[%s847_s1 + $0x380] sm:$0xff] }
  0x30   :  { %277 = vmatpush.msrb.mxu0 %v89_v22  ;;  %336 = vmatpush.msrb.mxu3 %v138_v30  ;;  %v175_v11 = vld.sshfl [vmem:[#allocation1 + $0x20] sm:$0xff pattern:$0x73625140]  ;;  %v178_v12 = vld.sshfl [vmem:[#allocation1 + $0x38] sm:$0xff pattern:$0x73625140] }
  0x31   :  { %317 = vmatpush.msrb.mxu2 %v121_v29  ;;  %296 = vmatpush.msrb.mxu1 %v106_v32  ;;  %v156_v13 = vld [vmem:[%s847_s1 + $0x458] sm:$0xff]  ;;  %v97_v14 = vld [vmem:[%s847_s1 + $0x280] sm:$0xff]  ;;  %v176_v15 = vld.sshfl [vmem:[#allocation1 + $0x28] sm:$0xff pattern:$0x73625140] }
  0x32   :  { %278 = vmatpush.msrb.mxu0 %v88_v28  ;;  %337 = vmatpush.msrb.mxu3 %v137_v40  ;;  %v155_v16 = vld [vmem:[%s847_s1 + $0x450] sm:$0xff]  ;;  %v154_v17 = vld [vmem:[%s847_s1 + $0x448] sm:$0xff]  ;;  %v153_v18 = vld [vmem:[%s847_s1 + $0x440] sm:$0xff] }
  0x33   :  { %318 = vmatpush.msrb.mxu2 %v120_v33  ;;  %297 = vmatpush.msrb.mxu1 %v105_v41  ;;  %v152_v19 = vld [vmem:[%s847_s1 + $0x438] sm:$0xff]  ;;  %v151_v20 = vld [vmem:[%s847_s1 + $0x430] sm:$0xff]  ;;  %v150_v21 = vld [vmem:[%s847_s1 + $0x428] sm:$0xff] }
  0x34   :  { %279 = vmatpush.msrb.mxu0 %v87_v39  ;;  %338 = vmatpush.msrb.mxu3 %v136_v44  ;;  %v149_v22 = vld [vmem:[%s847_s1 + $0x420] sm:$0xff]  ;;  %v148_v23 = vld [vmem:[%s847_s1 + $0x418] sm:$0xff]  ;;  %v147_v24 = vld [vmem:[%s847_s1 + $0x410] sm:$0xff] }
  0x35   :  { %319 = vmatpush.msrb.mxu2 %v119_v42  ;;  %298 = vmatpush.msrb.mxu1 %v104_v45  ;;  %v146_v25 = vld [vmem:[%s847_s1 + $0x408] sm:$0xff]  ;;  %v145_v26 = vld [vmem:[%s847_s1 + $0x400] sm:$0xff] }
  0x36   :  { %280 = vmatpush.msrb.mxu0 %v86_v43  ;;  %339 = vmatpush.msrb.mxu3 %v135_v48  ;;  %v180_v27 = vld.sshfl [vmem:[#allocation1] sm:$0xff pattern:$0x73625140] }
  0x37   :  { %320 = vmatpush.msrb.mxu2 %v118_v46  ;;  %299 = vmatpush.msrb.mxu1 %v103_v49  ;;  %v376_v28 = vld [vmem:[%s849_s2] ss:$0 sm:$0xff] }
  0x38   :  { %281 = vmatpush.msrb.mxu0 %v85_v47  ;;  %340 = vmatpush.msrb.mxu3 %v134_v52 }
  0x39   :  { %321 = vmatpush.msrb.mxu2 %v117_v50  ;;  %300 = vmatpush.msrb.mxu1 %v102_v53 }
  0x3a   :  { %282 = vmatpush.msrb.mxu0 %v84_v51  ;;  %246 = vmatmul.f32.vlgmr.msra.gmra.mxu2 %v173_v35 }
  0x3b   :  { %322 = vmatpush.msrb.mxu2 %v116_v55  ;;  %341 = vmatpush.msrb.mxu3 %v133_v56 }
  0x3c   :  { %283 = vmatpush.msrb.mxu0 %v83_v54  ;;  %266 = vmatmul.f32.vlgmr.msra.gmra.mxu3 %v174_v37 }
  0x3d   :  { %206 = vmatmul.f32.vlgmr.msra.gmra.mxu0 %v171_v36  ;;  %301 = vmatpush.msrb.mxu1 %v101_v58 }
  0x3e   :  { %284 = vmatpush.msrb.mxu0 %v82_v57  ;;  %323 = vmatpush.msrb.mxu2 %v115_v59 }
  0x3f   :  { %342 = vmatpush.msrb.mxu3 %v132_v61  ;;  %226 = vmatmul.f32.vlgmr.msra.gmra.mxu1 %v694_v38 }
  0x40   :  { %285 = vmatpush.msrb.mxu0 %v81_v60  ;;  %302 = vmatpush.msrb.mxu1 %v100_v63 }
  0x41   :  { %324 = vmatpush.msrb.mxu2 %v114_v0  ;;  %343 = vmatpush.msrb.mxu3 %v131_v2 }
  0x42   :  { %350 = vmatpush.msra.mxu0 %v160_v62  ;;  %303 = vmatpush.msrb.mxu1 %v99_v3 }
  0x43   :  { %325 = vmatpush.msrb.mxu2 %v113_v4  ;;  %344 = vmatpush.msrb.mxu3 %v130_v6 }
  0x44   :  { %351 = vmatpush.msra.mxu0 %v159_v1  ;;  %326 = vmatmul.f32.vlgmr.msrb.gmra.mxu2 %v177_v7 }
  0x45   :  { %304 = vmatpush.msrb.mxu1 %v98_v8  ;;  %345 = vmatpush.msrb.mxu3 %v129_v10 }
  0x46   :  { %352 = vmatpush.msra.mxu0 %v158_v5  ;;  %346 = vmatmul.f32.vlgmr.msrb.gmra.mxu3 %v178_v12 }
  0x47   :  { %286 = vmatmul.f32.vlgmr.msrb.gmra.mxu0 %v175_v11  ;;  %305 = vmatpush.msrb.mxu1 %v97_v14 }
  0x48   :  { %353 = vmatpush.msra.mxu0 %v157_v9  ;;  %306 = vmatmul.f32.vlgmr.msrb.gmra.mxu1 %v176_v15 }
  0x4a   :  { %354 = vmatpush.msra.mxu0 %v156_v13 }
  0x4c   :  { %355 = vmatpush.msra.mxu0 %v155_v16 }
  0x4e   :  { %356 = vmatpush.msra.mxu0 %v154_v17 }
  0x50   :  { %357 = vmatpush.msra.mxu0 %v153_v18 }
  0x52   :  { %358 = vmatpush.msra.mxu0 %v152_v19 }
  0x54   :  { %359 = vmatpush.msra.mxu0 %v151_v20 }
  0x56   :  { %360 = vmatpush.msra.mxu0 %v150_v21 }
  0x58   :  { %361 = vmatpush.msra.mxu0 %v149_v22 }
  0x5a   :  { %362 = vmatpush.msra.mxu0 %v148_v23 }
  0x5c   :  { %363 = vmatpush.msra.mxu0 %v147_v24 }
  0x5e   :  { %364 = vmatpush.msra.mxu0 %v146_v25 }
  0x60   :  { %365 = vmatpush.msra.mxu0 %v145_v26 }
  0x61   :  { %366 = vmatmul.f32.vlgmr.msra.gmra.mxu0 %v180_v27 }
  0xba   :  { %v207_v29 = vpop.f32.mrf.mxu0 }
  0xbb   :  { %v208_v30 = vadd.f32 %v376_v28, %v207_v29 }
  0xbc   :  { %v227_v31 = vpop.f32.mrf.mxu1 }
  0xbd   :  { %v228_v32 = vadd.f32 %v227_v31, %v208_v30  ;;  %v247_v33 = vpop.f32.mrf.mxu2 }
  0xbf   :  { %v248_v34 = vadd.f32 %v247_v33, %v228_v32  ;;  %v267_v35 = vpop.f32.mrf.mxu3 }
  0xc1   :  { %v268_v36 = vadd.f32 %v267_v35, %v248_v34 }
  0xc4   :  { %v287_v37 = vpop.f32.mrf.mxu0 }
  0xc5   :  { %v288_v38 = vadd.f32 %v287_v37, %v268_v36  ;;  %v307_v39 = vpop.f32.mrf.mxu1 }
  0xc7   :  { %v308_v40 = vadd.f32 %v307_v39, %v288_v38  ;;  %v327_v41 = vpop.f32.mrf.mxu2 }
  0xc9   :  { %v328_v42 = vadd.f32 %v327_v41, %v308_v40  ;;  %v347_v43 = vpop.f32.mrf.mxu3 }
  0xcb   :  { %v348_v44 = vadd.f32 %v347_v43, %v328_v42 }
  0xde   :  { %v367_v45 = vpop.f32.mrf.mxu0 }
  0xdf   :  { %v368_v46 = vadd.f32 %v367_v45, %v348_v44 }
  0xe1   :  { %v370_v47 = vmax.f32 %v368_v46, 0.0 }
  0xe3   :  { %371 = vst [vmem:[%s850_s3] sm:$0x3] %v370_v47 }

// kernel: duel_cnn_forward.7
= control target key start
LH: loop header
LB: loop body
LE: loop exit
PB: predicated region body
PF: predicated region fallthrough
CT: control target
= control target key end

     0   :  { %s503_s0 = inlined_call_operand.vmem [shape: f32[2,128], index: 0, kind: input, shape index: {}]   ;;  %s504_s1 = inlined_call_operand.vmem [shape: f32[128,256], index: 1, kind: input, shape index: {}]   ;;  %s505_s2 = inlined_call_operand.vmem [shape: f32[1,256], index: 2, kind: input, shape index: {}]   ;;  %s506_s3 = inlined_call_operand.vmem [shape: f32[256,5], index: 3, kind: input, shape index: {}]   ;;  %s507_s4 = inlined_call_operand.vmem [shape: f32[1,5], index: 4, kind: input, shape index: {}]   ;;  %s508_s5 = inlined_call_operand.hbm [shape: f32[2,4], index: 5, kind: output, shape index: {}]  }
   0x1   :  { %v52_v0 = vld [vmem:[%s504_s1 + $0xf0] sm:$0xff]  ;;  %v53_v1 = vld [vmem:[%s504_s1 + $0xf8] sm:$0xff]  ;;  %v50_v2 = vld [vmem:[%s504_s1 + $0xe0] sm:$0xff] }
   0x2   :  { %60 = vmatpush.msra.mxu0 %v52_v0  ;;  %80 = vmatpush.msra.mxu1 %v53_v1  ;;  %v51_v3 = vld [vmem:[%s504_s1 + $0xe8] sm:$0xff]  ;;  %v48_v4 = vld [vmem:[%s504_s1 + $0xd0] sm:$0xff]  ;;  %v49_v5 = vld [vmem:[%s504_s1 + $0xd8] sm:$0xff] }
   0x3   :  { %v46_v6 = vld [vmem:[%s504_s1 + $0xc0] sm:$0xff]  ;;  %v47_v7 = vld [vmem:[%s504_s1 + $0xc8] sm:$0xff]  ;;  %v44_v8 = vld [vmem:[%s504_s1 + $0xb0] sm:$0xff] }
   0x4   :  { %61 = vmatpush.msra.mxu0 %v50_v2  ;;  %81 = vmatpush.msra.mxu1 %v51_v3  ;;  %v45_v9 = vld [vmem:[%s504_s1 + $0xb8] sm:$0xff]  ;;  %v42_v10 = vld [vmem:[%s504_s1 + $0xa0] sm:$0xff]  ;;  %v43_v11 = vld [vmem:[%s504_s1 + $0xa8] sm:$0xff] }
   0x5   :  { %v40_v12 = vld [vmem:[%s504_s1 + $0x90] sm:$0xff]  ;;  %v41_v13 = vld [vmem:[%s504_s1 + $0x98] sm:$0xff]  ;;  %v38_v17 = vld [vmem:[%s504_s1 + $0x80] sm:$0xff] }
   0x6   :  { %62 = vmatpush.msra.mxu0 %v48_v4  ;;  %82 = vmatpush.msra.mxu1 %v49_v5  ;;  %v121_v14 = vld [vmem:[%s506_s3 + $0x78] sm:$0xff]  ;;  %v120_v16 = vld [vmem:[%s506_s3 + $0x70] sm:$0xff]  ;;  %v39_v18 = vld [vmem:[%s504_s1 + $0x88] sm:$0xff] }
   0x7   :  { %v137_v15 = vld [vmem:[%s506_s3 + $0xf8] sm:$0xff]  ;;  %142 = vmatpush.msra.mxu2 %v121_v14  ;;  %v136_v19 = vld [vmem:[%s506_s3 + $0xf0] sm:$0xff]  ;;  %v119_v20 = vld [vmem:[%s506_s3 + $0x68] sm:$0xff] }
   0x8   :  { %63 = vmatpush.msra.mxu0 %v46_v6  ;;  %83 = vmatpush.msra.mxu1 %v47_v7  ;;  %v135_v21 = vld [vmem:[%s506_s3 + $0xe8] sm:$0xff]  ;;  %v36_v22 = vld [vmem:[%s504_s1 + $0x70] sm:$0xff]  ;;  %v37_v23 = vld [vmem:[%s504_s1 + $0x78] sm:$0xff] }
   0x9   :  { %162 = vmatpush.msra.mxu3 %v137_v15  ;;  %143 = vmatpush.msra.mxu2 %v120_v16  ;;  %v118_v24 = vld [vmem:[%s506_s3 + $0x60] sm:$0xff]  ;;  %v35_v27 = vld [vmem:[%s504_s1 + $0x68] sm:$0xff]  ;;  %v117_v28 = vld [vmem:[%s506_s3 + $0x58] sm:$0xff] }
   0xa   :  { %64 = vmatpush.msra.mxu0 %v44_v8  ;;  %84 = vmatpush.msra.mxu1 %v45_v9  ;;  %v134_v25 = vld [vmem:[%s506_s3 + $0xe0] sm:$0xff]  ;;  %v133_v29 = vld [vmem:[%s506_s3 + $0xd8] sm:$0xff]  ;;  %v32_v30 = vld [vmem:[%s504_s1 + $0x50] sm:$0xff] }
   0xb   :  { %163 = vmatpush.msra.mxu3 %v136_v19  ;;  %v34_v26 = vld [vmem:[%s504_s1 + $0x60] sm:$0xff]  ;;  %144 = vmatpush.msra.mxu2 %v119_v20  ;;  %v33_v31 = vld [vmem:[%s504_s1 + $0x58] sm:$0xff]  ;;  %v116_v33 = vld [vmem:[%s506_s3 + $0x50] sm:$0xff] }
   0xc   :  { %65 = vmatpush.msra.mxu0 %v42_v10  ;;  %85 = vmatpush.msra.mxu1 %v43_v11  ;;  %v30_v32 = vld [vmem:[%s504_s1 + $0x40] sm:$0xff]  ;;  %v132_v34 = vld [vmem:[%s506_s3 + $0xd0] sm:$0xff]  ;;  %v31_v35 = vld [vmem:[%s504_s1 + $0x48] sm:$0xff] }
   0xd   :  { %164 = vmatpush.msra.mxu3 %v135_v21  ;;  %145 = vmatpush.msra.mxu2 %v118_v24 }
   0xe   :  { %66 = vmatpush.msra.mxu0 %v40_v12  ;;  %86 = vmatpush.msra.mxu1 %v41_v13 }
   0xf   :  { %165 = vmatpush.msra.mxu3 %v134_v25  ;;  %146 = vmatpush.msra.mxu2 %v117_v28 }
  0x10   :  { %67 = vmatpush.msra.mxu0 %v38_v17  ;;  %87 = vmatpush.msra.mxu1 %v39_v18 }
  0x11   :  { %166 = vmatpush.msra.mxu3 %v133_v29 }
  0x12   :  { %68 = vmatpush.msra.mxu0 %v36_v22  ;;  %88 = vmatpush.msra.mxu1 %v37_v23 }
  0x14   :  { %69 = vmatpush.msra.mxu0 %v34_v26  ;;  %89 = vmatpush.msra.mxu1 %v35_v27 }
  0x15   :  { %10 = vsyncpa [#allocation3], 0  ;;  %v115_v36 = vld [vmem:[%s506_s3 + $0x48] sm:$0xff]  ;;  %v28_v38 = vld [vmem:[%s504_s1 + $0x30] sm:$0xff]  ;;  %147 = vmatpush.msra.mxu2 %v116_v33  ;;  %167 = vmatpush.msra.mxu3 %v132_v34  ;;  %v264_v12 = vmov 4   ;;  %vm182_vm2 = vcmask 25600  }
  0x16   :  { %70 = vmatpush.msra.mxu0 %v32_v30  ;;  %90 = vmatpush.msra.mxu1 %v33_v31  ;;  %v131_v37 = vld [vmem:[%s506_s3 + $0xc8] sm:$0xff]  ;;  %v29_v39 = vld [vmem:[%s504_s1 + $0x38] sm:$0xff]  ;;  %v114_v40 = vld [vmem:[%s506_s3 + $0x40] sm:$0xff]  ;;  %v265_v19 = vmov 8.0   ;;  %s266_s25 = smov [#allocation2]   ;;  %s218_s28 = sshll.u32 %s508_s5, 4  ;;  %s219_s28 = int_to_ptr.hbm [resolvable:$true] %s218_s28 }
  0x17   :  { %v130_v41 = vld [vmem:[%s506_s3 + $0xc0] sm:$0xff]  ;;  %v27_v43 = vld [vmem:[%s504_s1 + $0x28] sm:$0xff]  ;;  %148 = vmatpush.msra.mxu2 %v115_v36  ;;  %168 = vmatpush.msra.mxu3 %v131_v37  ;;  %v113_v44 = vld [vmem:[%s506_s3 + $0x38] sm:$0xff]  ;;  %236 = vrcp.f32 %v265_v19  ;;  %s216_s26 = sshll.u32 %s266_s25, 4  ;;  %s217_s26 = int_to_ptr.vmem [resolvable:$true] %s216_s26 }
  0x18   :  { %71 = vmatpush.msra.mxu0 %v30_v32  ;;  %91 = vmatpush.msra.mxu1 %v31_v35  ;;  %v26_v42 = vld [vmem:[%s504_s1 + $0x20] sm:$0xff]  ;;  %v129_v45 = vld [vmem:[%s506_s3 + $0xb8] sm:$0xff]  ;;  %v24_v46 = vld [vmem:[%s504_s1 + $0x10] sm:$0xff] }
  0x19   :  { %v25_v47 = vld [vmem:[%s504_s1 + $0x18] sm:$0xff]  ;;  %149 = vmatpush.msra.mxu2 %v114_v40  ;;  %169 = vmatpush.msra.mxu3 %v130_v41  ;;  %v112_v48 = vld [vmem:[%s506_s3 + $0x30] sm:$0xff]  ;;  %v22_v50 = vld [vmem:[%s504_s1] sm:$0xff] }
  0x1a   :  { %72 = vmatpush.msra.mxu0 %v28_v38  ;;  %92 = vmatpush.msra.mxu1 %v29_v39  ;;  %v128_v49 = vld [vmem:[%s506_s3 + $0xb0] sm:$0xff]  ;;  %v23_v51 = vld [vmem:[%s504_s1 + $0x8] sm:$0xff]  ;;  %v21_v52 = vld [vmem:[%s503_s0] sm:$0x3] }
  0x1b   :  { %150 = vmatpush.msra.mxu2 %v113_v44  ;;  %170 = vmatpush.msra.mxu3 %v129_v45  ;;  %v111_v53 = vld [vmem:[%s506_s3 + $0x28] sm:$0xff]  ;;  %v110_v55 = vld [vmem:[%s506_s3 + $0x20] sm:$0xff]  ;;  %v109_v57 = vld [vmem:[%s506_s3 + $0x18] sm:$0xff] }
  0x1c   :  { %73 = vmatpush.msra.mxu0 %v26_v42  ;;  %93 = vmatpush.msra.mxu1 %v27_v43  ;;  %v127_v54 = vld [vmem:[%s506_s3 + $0xa8] sm:$0xff]  ;;  %v126_v56 = vld [vmem:[%s506_s3 + $0xa0] sm:$0xff]  ;;  %v125_v58 = vld [vmem:[%s506_s3 + $0x98] sm:$0xff] }
  0x1d   :  { %151 = vmatpush.msra.mxu2 %v112_v48  ;;  %171 = vmatpush.msra.mxu3 %v128_v49  ;;  %v108_v59 = vld [vmem:[%s506_s3 + $0x10] sm:$0xff]  ;;  %v107_v61 = vld [vmem:[%s506_s3 + $0x8] sm:$0xff]  ;;  %v106_v63 = vld [vmem:[%s506_s3] sm:$0xff]  ;;  %v237_v20 = vpop.eup %236 }
  0x1e   :  { %74 = vmatpush.msra.mxu0 %v24_v46  ;;  %94 = vmatpush.msra.mxu1 %v25_v47  ;;  %v124_v60 = vld [vmem:[%s506_s3 + $0x90] sm:$0xff]  ;;  %v123_v62 = vld [vmem:[%s506_s3 + $0x88] sm:$0xff]  ;;  %v122_v0 = vld [vmem:[%s506_s3 + $0x80] sm:$0xff]  ;;  %v194_v21 = vmul.f32 8.0, %v237_v20  ;;  %vm198_vm3 = vweird.f32 %v237_v20 }
  0x1f   :  { %152 = vmatpush.msra.mxu2 %v111_v53  ;;  %172 = vmatpush.msra.mxu3 %v127_v54  ;;  %v54_v1 = vld [vmem:[%s505_s2] sm:$0x3] }
  0x20   :  { %75 = vmatpush.msra.mxu0 %v22_v50  ;;  %95 = vmatpush.msra.mxu1 %v23_v51  ;;  %v56_v2 = vperm.slane %v54_v1, 0  ;;  %v57_v3 = vperm.slane %v54_v1, 1  ;;  %v235_v13 = vld [vmem:[%s507_s4] ss:$0 sm:$0xff]  ;;  %v195_v22 = vsub.f32 1.0, %v194_v21 }
  0x21   :  { %76 = vmatmul.f32.vlgmr.msra.gmra.mxu0 %v21_v52  ;;  %96 = vmatmul.f32.vlgmr.msra.gmra.mxu1 %v21_v52 }
  0x22   :  { %153 = vmatpush.msra.mxu2 %v110_v55  ;;  %173 = vmatpush.msra.mxu3 %v126_v56  ;;  %v196_v26 = vmul.f32 %v237_v20, %v195_v22 }
  0x23   :  { %234 = vset.pattern.permute.xlu0 %v264_v12 }
  0x24   :  { %154 = vmatpush.msra.mxu2 %v109_v57  ;;  %174 = vmatpush.msra.mxu3 %v125_v58  ;;  %v197_v29 = vadd.f32 %v237_v20, %v196_v26 }
  0x26   :  { %155 = vmatpush.msra.mxu2 %v108_v59  ;;  %175 = vmatpush.msra.mxu3 %v124_v60  ;;  %v199_v32 = vsel %vm198_vm3, %v237_v20, %v197_v29 }
  0x28   :  { %156 = vmatpush.msra.mxu2 %v107_v61  ;;  %176 = vmatpush.msra.mxu3 %v123_v62 }
  0x2a   :  { %157 = vmatpush.msra.mxu2 %v106_v63  ;;  %177 = vmatpush.msra.mxu3 %v122_v0 }
  0x9e   :  { %v77_v4 = vpop.f32.mrf.mxu0  ;;  %v97_v5 = vpop.f32.mrf.mxu1 }
  0x9f   :  { %v78_v6 = vadd.f32 %v77_v4, %v56_v2  ;;  %v98_v7 = vadd.f32 %v97_v5, %v57_v3 }
  0xa1   :  { %vm100_vm0 = vcmp.ge.f32.partialorder %v78_v6, 0.0  ;;  %v102_v8 = vmul.f32 0.01, %v78_v6  ;;  %vm101_vm1 = vcmp.ge.f32.partialorder %v98_v7, 0.0  ;;  %v103_v9 = vmul.f32 0.01, %v98_v7 }
  0xa3   :  { %v104_v10 = vsel %vm100_vm0, %v78_v6, %v102_v8  ;;  %v105_v11 = vsel %vm101_vm1, %v98_v7, %v103_v9 }
  0xa4   :  { %158 = vmatmul.f32.vlgmr.msra.gmra.mxu2 %v104_v10  ;;  %178 = vmatmul.f32.vlgmr.msra.gmra.mxu3 %v105_v11 }
 0x127   :  { %v159_v14 = vpop.f32.mrf.mxu2  ;;  %v179_v16 = vpop.f32.mrf.mxu3 }
 0x128   :  { %v160_v15 = vadd.f32 %v235_v13, %v159_v14 }
 0x12a   :  { %v180_v17 = vadd.f32 %v179_v16, %v160_v15 }
 0x12c   :  { %v183_v18 = vsel %vm182_vm2, %v180_v17, 0.0 }
 0x12d   :  { %184 = vadd.xlane.f32.xlu0 %v183_v18 }
 0x141   :  { %206 = vperm.xlu0 %234, %v180_v17  }
 0x1a0   :  { %v185_v23 = vpop.xlane.xlu0 %184 }
 0x1a1   :  { %v186_v24 = vrot.slane %v185_v23, 4 }
 0x1a3   :  { %v187_v25 = vadd.f32 %v186_v24, %v185_v23 }
 0x1a5   :  { %v188_v27 = vrot.slane %v187_v25, 2 }
 0x1a7   :  { %v189_v28 = vadd.f32 %v188_v27, %v187_v25 }
 0x1a9   :  { %v190_v30 = vrot.slane %v189_v28, 1 }
 0x1ab   :  { %v191_v31 = vadd.f32 %v190_v30, %v189_v28 }
 0x1ad   :  { %227 = vpush %v191_v31 }
 0x1ae   :  { %229 = vpush %v199_v32 }
 0x1b3   :  { %v207_v35 = vpop.permute.xlu0 %206 }
 0x1de   :  { %s228_s2 = spop %227 }
 0x1df   :  { %s230_s4 = spop %229 }
 0x1e0   :  { %s201_s24 = smul.f32 %s230_s4, %s228_s2 }
 0x1e2   :  { %v202_v33 = vstv %s201_s24 }
 0x1e3   :  { %v203_v34 = vsub.f32 %v180_v17, %v202_v33 }
 0x1e5   :  { %v209_v36 = vadd.f32 %v207_v35, %v203_v34 }
 0x1e7   :  { %210 = vst.msk [vmem:[#allocation2] sm:$0x3] %vm182_vm2, %v209_v36 }
 0x1e8   :  { %221 = dma.vmem_to_hbm [thread:$0]  %s217_s26, 32, %s219_s28, [#allocation3]  }
 0x1e9   :  { %262 = dma.done.wait [#allocation3], 32  }
 0x1ea   :  { %263 = vsyncadd [#allocation3], 4294967264 }
 0x1eb   :  { %226 = vsyncpa [#allocation3], 1 }

// kernel: duel_cnn_forward.5
= control target key start
LH: loop header
LB: loop body
LE: loop exit
PB: predicated region body
PF: predicated region fallthrough
CT: control target
= control target key end

     0   :  { %s1693_s1 = inlined_call_operand.vmem [shape: f32[2048,128], index: 1, kind: input, shape index: {}]   ;;  %s1694_s0 = inlined_call_operand.vmem [shape: f32[18,2048], index: 0, kind: input, shape index: {}]   ;;  %s1695_s2 = inlined_call_operand.vmem [shape: f32[1,128], index: 2, kind: input, shape index: {}]   ;;  %s1696_s3 = inlined_call_operand.vmem [shape: f32[18,128], index: 3, kind: output, shape index: {}]  }
   0x1   :  { %v77_v0 = vld [vmem:[%s1693_s1 + $0x78] sm:$0xff]  ;;  %v76_v2 = vld [vmem:[%s1693_s1 + $0x70] sm:$0xff]  ;;  %v75_v6 = vld [vmem:[%s1693_s1 + $0x68] sm:$0xff] }
   0x2   :  { %v109_v1 = vld [vmem:[%s1693_s1 + $0x178] sm:$0xff]  ;;  %322 = vmatpush.msra.mxu0 %v77_v0  ;;  %v108_v4 = vld [vmem:[%s1693_s1 + $0x170] sm:$0xff]  ;;  %v107_v8 = vld [vmem:[%s1693_s1 + $0x168] sm:$0xff] }
   0x3   :  { %374 = vmatpush.msra.mxu2 %v109_v1  ;;  %v93_v3 = vld [vmem:[%s1693_s1 + $0xf8] sm:$0xff]  ;;  %v92_v7 = vld [vmem:[%s1693_s1 + $0xf0] sm:$0xff]  ;;  %v91_v10 = vld [vmem:[%s1693_s1 + $0xe8] sm:$0xff] }
   0x4   :  { %v125_v5 = vld [vmem:[%s1693_s1 + $0x1f8] sm:$0xff]  ;;  %348 = vmatpush.msra.mxu1 %v93_v3  ;;  %323 = vmatpush.msra.mxu0 %v76_v2  ;;  %v124_v9 = vld [vmem:[%s1693_s1 + $0x1f0] sm:$0xff]  ;;  %v74_v11 = vld [vmem:[%s1693_s1 + $0x60] sm:$0xff] }
   0x5   :  { %400 = vmatpush.msra.mxu3 %v125_v5  ;;  %375 = vmatpush.msra.mxu2 %v108_v4  ;;  %v106_v12 = vld [vmem:[%s1693_s1 + $0x160] sm:$0xff]  ;;  %v123_v13 = vld [vmem:[%s1693_s1 + $0x1e8] sm:$0xff]  ;;  %v73_v16 = vld [vmem:[%s1693_s1 + $0x58] sm:$0xff] }
   0x6   :  { %349 = vmatpush.msra.mxu1 %v92_v7  ;;  %324 = vmatpush.msra.mxu0 %v75_v6  ;;  %v90_v14 = vld [vmem:[%s1693_s1 + $0xe0] sm:$0xff]  ;;  %v105_v17 = vld [vmem:[%s1693_s1 + $0x158] sm:$0xff]  ;;  %v72_v20 = vld [vmem:[%s1693_s1 + $0x50] sm:$0xff] }
   0x7   :  { %401 = vmatpush.msra.mxu3 %v124_v9  ;;  %376 = vmatpush.msra.mxu2 %v107_v8  ;;  %v122_v15 = vld [vmem:[%s1693_s1 + $0x1e0] sm:$0xff]  ;;  %v89_v18 = vld [vmem:[%s1693_s1 + $0xd8] sm:$0xff]  ;;  %v104_v21 = vld [vmem:[%s1693_s1 + $0x150] sm:$0xff] }
   0x8   :  { %350 = vmatpush.msra.mxu1 %v91_v10  ;;  %325 = vmatpush.msra.mxu0 %v74_v11  ;;  %v121_v19 = vld [vmem:[%s1693_s1 + $0x1d8] sm:$0xff]  ;;  %v88_v22 = vld [vmem:[%s1693_s1 + $0xd0] sm:$0xff]  ;;  %v71_v24 = vld [vmem:[%s1693_s1 + $0x48] sm:$0xff] }
   0x9   :  { %402 = vmatpush.msra.mxu3 %v123_v13  ;;  %377 = vmatpush.msra.mxu2 %v106_v12  ;;  %v120_v23 = vld [vmem:[%s1693_s1 + $0x1d0] sm:$0xff]  ;;  %v103_v25 = vld [vmem:[%s1693_s1 + $0x148] sm:$0xff]  ;;  %v70_v28 = vld [vmem:[%s1693_s1 + $0x40] sm:$0xff] }
   0xa   :  { %351 = vmatpush.msra.mxu1 %v90_v14  ;;  %326 = vmatpush.msra.mxu0 %v73_v16  ;;  %v87_v26 = vld [vmem:[%s1693_s1 + $0xc8] sm:$0xff]  ;;  %v102_v29 = vld [vmem:[%s1693_s1 + $0x140] sm:$0xff]  ;;  %v69_v32 = vld [vmem:[%s1693_s1 + $0x38] sm:$0xff] }
   0xb   :  { %403 = vmatpush.msra.mxu3 %v122_v15  ;;  %378 = vmatpush.msra.mxu2 %v105_v17  ;;  %v119_v27 = vld [vmem:[%s1693_s1 + $0x1c8] sm:$0xff]  ;;  %v86_v30 = vld [vmem:[%s1693_s1 + $0xc0] sm:$0xff]  ;;  %v101_v33 = vld [vmem:[%s1693_s1 + $0x138] sm:$0xff] }
   0xc   :  { %352 = vmatpush.msra.mxu1 %v89_v18  ;;  %327 = vmatpush.msra.mxu0 %v72_v20  ;;  %v118_v31 = vld [vmem:[%s1693_s1 + $0x1c0] sm:$0xff]  ;;  %v85_v34 = vld [vmem:[%s1693_s1 + $0xb8] sm:$0xff]  ;;  %v68_v36 = vld [vmem:[%s1693_s1 + $0x30] sm:$0xff] }
   0xd   :  { %404 = vmatpush.msra.mxu3 %v121_v19  ;;  %379 = vmatpush.msra.mxu2 %v104_v21  ;;  %v117_v35 = vld [vmem:[%s1693_s1 + $0x1b8] sm:$0xff]  ;;  %v100_v37 = vld [vmem:[%s1693_s1 + $0x130] sm:$0xff]  ;;  %v67_v40 = vld [vmem:[%s1693_s1 + $0x28] sm:$0xff] }
   0xe   :  { %353 = vmatpush.msra.mxu1 %v88_v22  ;;  %328 = vmatpush.msra.mxu0 %v71_v24  ;;  %v84_v38 = vld [vmem:[%s1693_s1 + $0xb0] sm:$0xff]  ;;  %v99_v41 = vld [vmem:[%s1693_s1 + $0x128] sm:$0xff]  ;;  %v66_v44 = vld [vmem:[%s1693_s1 + $0x20] sm:$0xff] }
   0xf   :  { %405 = vmatpush.msra.mxu3 %v120_v23  ;;  %380 = vmatpush.msra.mxu2 %v103_v25  ;;  %v116_v39 = vld [vmem:[%s1693_s1 + $0x1b0] sm:$0xff]  ;;  %v83_v42 = vld [vmem:[%s1693_s1 + $0xa8] sm:$0xff]  ;;  %v98_v45 = vld [vmem:[%s1693_s1 + $0x120] sm:$0xff] }
  0x10   :  { %354 = vmatpush.msra.mxu1 %v87_v26  ;;  %329 = vmatpush.msra.mxu0 %v70_v28  ;;  %v115_v43 = vld [vmem:[%s1693_s1 + $0x1a8] sm:$0xff]  ;;  %v82_v46 = vld [vmem:[%s1693_s1 + $0xa0] sm:$0xff]  ;;  %v65_v48 = vld [vmem:[%s1693_s1 + $0x18] sm:$0xff] }
  0x11   :  { %406 = vmatpush.msra.mxu3 %v119_v27  ;;  %381 = vmatpush.msra.mxu2 %v102_v29  ;;  %v114_v47 = vld [vmem:[%s1693_s1 + $0x1a0] sm:$0xff]  ;;  %v97_v49 = vld [vmem:[%s1693_s1 + $0x118] sm:$0xff]  ;;  %v64_v52 = vld [vmem:[%s1693_s1 + $0x10] sm:$0xff] }
  0x12   :  { %355 = vmatpush.msra.mxu1 %v86_v30  ;;  %330 = vmatpush.msra.mxu0 %v69_v32  ;;  %v81_v50 = vld [vmem:[%s1693_s1 + $0x98] sm:$0xff]  ;;  %v96_v53 = vld [vmem:[%s1693_s1 + $0x110] sm:$0xff]  ;;  %v63_v56 = vld [vmem:[%s1693_s1 + $0x8] sm:$0xff] }
  0x13   :  { %407 = vmatpush.msra.mxu3 %v118_v31  ;;  %382 = vmatpush.msra.mxu2 %v101_v33  ;;  %v113_v51 = vld [vmem:[%s1693_s1 + $0x198] sm:$0xff]  ;;  %v80_v54 = vld [vmem:[%s1693_s1 + $0x90] sm:$0xff]  ;;  %v95_v57 = vld [vmem:[%s1693_s1 + $0x108] sm:$0xff] }
  0x14   :  { %356 = vmatpush.msra.mxu1 %v85_v34  ;;  %331 = vmatpush.msra.mxu0 %v68_v36  ;;  %v112_v55 = vld [vmem:[%s1693_s1 + $0x190] sm:$0xff]  ;;  %v79_v58 = vld [vmem:[%s1693_s1 + $0x88] sm:$0xff]  ;;  %v62_v60 = vld [vmem:[%s1693_s1] sm:$0xff] }
  0x15   :  { %408 = vmatpush.msra.mxu3 %v117_v35  ;;  %383 = vmatpush.msra.mxu2 %v100_v37  ;;  %v111_v59 = vld [vmem:[%s1693_s1 + $0x188] sm:$0xff]  ;;  %v94_v61 = vld [vmem:[%s1693_s1 + $0x100] sm:$0xff]  ;;  %v141_v62 = vld [vmem:[%s1693_s1 + $0x278] sm:$0xff] }
  0x16   :  { %357 = vmatpush.msra.mxu1 %v84_v38  ;;  %332 = vmatpush.msra.mxu0 %v67_v40  ;;  %v173_v63 = vld [vmem:[%s1693_s1 + $0x378] sm:$0xff]  ;;  %v78_v0 = vld [vmem:[%s1693_s1 + $0x80] sm:$0xff]  ;;  %v140_v2 = vld [vmem:[%s1693_s1 + $0x270] sm:$0xff] }
  0x17   :  { %409 = vmatpush.msra.mxu3 %v116_v39  ;;  %384 = vmatpush.msra.mxu2 %v99_v41  ;;  %v110_v1 = vld [vmem:[%s1693_s1 + $0x180] sm:$0xff]  ;;  %v157_v3 = vld [vmem:[%s1693_s1 + $0x2f8] sm:$0xff]  ;;  %v172_v4 = vld [vmem:[%s1693_s1 + $0x370] sm:$0xff] }
  0x18   :  { %358 = vmatpush.msra.mxu1 %v83_v42  ;;  %333 = vmatpush.msra.mxu0 %v66_v44  ;;  %v189_v5 = vld [vmem:[%s1693_s1 + $0x3f8] sm:$0xff]  ;;  %v139_v6 = vld [vmem:[%s1693_s1 + $0x268] sm:$0xff]  ;;  %v156_v7 = vld [vmem:[%s1693_s1 + $0x2f0] sm:$0xff] }
  0x19   :  { %410 = vmatpush.msra.mxu3 %v115_v43  ;;  %385 = vmatpush.msra.mxu2 %v98_v45  ;;  %v171_v8 = vld [vmem:[%s1693_s1 + $0x368] sm:$0xff]  ;;  %v188_v9 = vld [vmem:[%s1693_s1 + $0x3f0] sm:$0xff]  ;;  %v138_v10 = vld [vmem:[%s1693_s1 + $0x260] sm:$0xff] }
  0x1a   :  { %359 = vmatpush.msra.mxu1 %v82_v46  ;;  %334 = vmatpush.msra.mxu0 %v65_v48  ;;  %v155_v11 = vld [vmem:[%s1693_s1 + $0x2e8] sm:$0xff]  ;;  %v170_v12 = vld [vmem:[%s1693_s1 + $0x360] sm:$0xff]  ;;  %v16_v15 = vld [vmem:[%s1694_s0 + $0x10] sm:$0xff] }
  0x1b   :  { %411 = vmatpush.msra.mxu3 %v114_v47  ;;  %386 = vmatpush.msra.mxu2 %v97_v49  ;;  %v187_v13 = vld [vmem:[%s1693_s1 + $0x3e8] sm:$0xff]  ;;  %v14_v14 = vld [vmem:[%s1694_s0] sm:$0xff]  ;;  %v137_v16 = vld [vmem:[%s1693_s1 + $0x258] sm:$0xff] }
  0x1c   :  { %360 = vmatpush.msra.mxu1 %v81_v50  ;;  %335 = vmatpush.msra.mxu0 %v64_v52  ;;  %v154_v17 = vld [vmem:[%s1693_s1 + $0x2e0] sm:$0xff]  ;;  %v169_v18 = vld [vmem:[%s1693_s1 + $0x358] sm:$0xff]  ;;  %v15_v20 = vld [vmem:[%s1694_s0 + $0x8] sm:$0xff] }
  0x1d   :  { %412 = vmatpush.msra.mxu3 %v113_v51  ;;  %387 = vmatpush.msra.mxu2 %v96_v53  ;;  %v186_v19 = vld [vmem:[%s1693_s1 + $0x3e0] sm:$0xff]  ;;  %v17_v21 = vld [vmem:[%s1694_s0 + $0x18] sm:$0xff]  ;;  %v136_v22 = vld [vmem:[%s1693_s1 + $0x250] sm:$0xff] }
  0x1e   :  { %361 = vmatpush.msra.mxu1 %v80_v54  ;;  %336 = vmatpush.msra.mxu0 %v63_v56  ;;  %v153_v23 = vld [vmem:[%s1693_s1 + $0x2d8] sm:$0xff]  ;;  %v168_v24 = vld [vmem:[%s1693_s1 + $0x350] sm:$0xff]  ;;  %v135_v26 = vld [vmem:[%s1693_s1 + $0x248] sm:$0xff] }
  0x1f   :  { %413 = vmatpush.msra.mxu3 %v112_v55  ;;  %388 = vmatpush.msra.mxu2 %v95_v57  ;;  %v185_v25 = vld [vmem:[%s1693_s1 + $0x3d8] sm:$0xff]  ;;  %v152_v27 = vld [vmem:[%s1693_s1 + $0x2d0] sm:$0xff]  ;;  %v167_v28 = vld [vmem:[%s1693_s1 + $0x348] sm:$0xff] }
  0x20   :  { %362 = vmatpush.msra.mxu1 %v79_v58  ;;  %337 = vmatpush.msra.mxu0 %v62_v60  ;;  %v184_v29 = vld [vmem:[%s1693_s1 + $0x3d0] sm:$0xff]  ;;  %v134_v30 = vld [vmem:[%s1693_s1 + $0x240] sm:$0xff]  ;;  %v151_v31 = vld [vmem:[%s1693_s1 + $0x2c8] sm:$0xff] }
  0x21   :  { %414 = vmatpush.msra.mxu3 %v111_v59  ;;  %389 = vmatpush.msra.mxu2 %v94_v61  ;;  %v166_v32 = vld [vmem:[%s1693_s1 + $0x340] sm:$0xff]  ;;  %v183_v33 = vld [vmem:[%s1693_s1 + $0x3c8] sm:$0xff]  ;;  %v32_v35 = vld [vmem:[%s1694_s0 + $0x90] sm:$0xff] }
  0x22   :  { %426 = vmatpush.msrb.mxu0 %v141_v62  ;;  %363 = vmatpush.msra.mxu1 %v78_v0  ;;  %v30_v34 = vld [vmem:[%s1694_s0 + $0x80] sm:$0xff]  ;;  %v133_v36 = vld [vmem:[%s1693_s1 + $0x238] sm:$0xff]  ;;  %v31_v40 = vld [vmem:[%s1694_s0 + $0x88] sm:$0xff] }
  0x23   :  { %478 = vmatpush.msrb.mxu2 %v173_v63  ;;  %415 = vmatpush.msra.mxu3 %v110_v1  ;;  %v150_v37 = vld [vmem:[%s1693_s1 + $0x2c0] sm:$0xff]  ;;  %v165_v38 = vld [vmem:[%s1693_s1 + $0x338] sm:$0xff]  ;;  %v132_v42 = vld [vmem:[%s1693_s1 + $0x230] sm:$0xff] }
  0x24   :  { %427 = vmatpush.msrb.mxu0 %v140_v2  ;;  %452 = vmatpush.msrb.mxu1 %v157_v3  ;;  %v182_v39 = vld [vmem:[%s1693_s1 + $0x3c0] sm:$0xff]  ;;  %v33_v41 = vld [vmem:[%s1694_s0 + $0x98] sm:$0xff]  ;;  %v164_v44 = vld [vmem:[%s1693_s1 + $0x330] sm:$0xff] }
  0x25   :  { %479 = vmatpush.msrb.mxu2 %v172_v4  ;;  %504 = vmatpush.msrb.mxu3 %v189_v5  ;;  %v149_v43 = vld [vmem:[%s1693_s1 + $0x2b8] sm:$0xff]  ;;  %v131_v46 = vld [vmem:[%s1693_s1 + $0x228] sm:$0xff]  ;;  %v148_v47 = vld [vmem:[%s1693_s1 + $0x2b0] sm:$0xff] }
  0x26   :  { %428 = vmatpush.msrb.mxu0 %v139_v6  ;;  %453 = vmatpush.msrb.mxu1 %v156_v7  ;;  %v181_v45 = vld [vmem:[%s1693_s1 + $0x3b8] sm:$0xff]  ;;  %v163_v48 = vld [vmem:[%s1693_s1 + $0x328] sm:$0xff]  ;;  %v180_v49 = vld [vmem:[%s1693_s1 + $0x3b0] sm:$0xff] }
  0x27   :  { %480 = vmatpush.msrb.mxu2 %v171_v8  ;;  %505 = vmatpush.msrb.mxu3 %v188_v9  ;;  %v130_v50 = vld [vmem:[%s1693_s1 + $0x220] sm:$0xff]  ;;  %v147_v51 = vld [vmem:[%s1693_s1 + $0x2a8] sm:$0xff]  ;;  %v48_v55 = vld [vmem:[%s1694_s0 + $0x110] sm:$0x3] }
  0x28   :  { %429 = vmatpush.msrb.mxu0 %v138_v10  ;;  %454 = vmatpush.msrb.mxu1 %v155_v11  ;;  %v162_v52 = vld [vmem:[%s1693_s1 + $0x320] sm:$0xff]  ;;  %v179_v53 = vld [vmem:[%s1693_s1 + $0x3a8] sm:$0xff]  ;;  %v129_v56 = vld [vmem:[%s1693_s1 + $0x218] sm:$0xff] }
  0x29   :  { %481 = vmatpush.msrb.mxu2 %v170_v12  ;;  %506 = vmatpush.msrb.mxu3 %v187_v13  ;;  %v46_v54 = vld [vmem:[%s1694_s0 + $0x100] sm:$0x3]  ;;  %v161_v58 = vld [vmem:[%s1693_s1 + $0x318] sm:$0xff]  ;;  %v47_v60 = vld [vmem:[%s1694_s0 + $0x108] sm:$0x3] }
  0x2a   :  { %338 = vmatmul.f32.vlgmr.msra.gmra.mxu0 %v14_v14  ;;  %390 = vmatmul.f32.vlgmr.msra.gmra.mxu2 %v16_v15  ;;  %v146_v57 = vld [vmem:[%s1693_s1 + $0x2a0] sm:$0xff]  ;;  %v49_v61 = vld [vmem:[%s1694_s0 + $0x118] sm:$0x3]  ;;  %v128_v62 = vld [vmem:[%s1693_s1 + $0x210] sm:$0xff] }
  0x2b   :  { %430 = vmatpush.msrb.mxu0 %v137_v16  ;;  %455 = vmatpush.msrb.mxu1 %v154_v17  ;;  %v178_v59 = vld [vmem:[%s1693_s1 + $0x3a0] sm:$0xff]  ;;  %v145_v63 = vld [vmem:[%s1693_s1 + $0x298] sm:$0xff]  ;;  %v160_v0 = vld [vmem:[%s1693_s1 + $0x310] sm:$0xff] }
  0x2c   :  { %482 = vmatpush.msrb.mxu2 %v169_v18  ;;  %507 = vmatpush.msrb.mxu3 %v186_v19  ;;  %v177_v1 = vld [vmem:[%s1693_s1 + $0x398] sm:$0xff]  ;;  %v127_v2 = vld [vmem:[%s1693_s1 + $0x208] sm:$0xff]  ;;  %v144_v3 = vld [vmem:[%s1693_s1 + $0x290] sm:$0xff] }
  0x2d   :  { %364 = vmatmul.f32.vlgmr.msra.gmra.mxu1 %v15_v20  ;;  %416 = vmatmul.f32.vlgmr.msra.gmra.mxu3 %v17_v21  ;;  %v159_v4 = vld [vmem:[%s1693_s1 + $0x308] sm:$0xff]  ;;  %v176_v5 = vld [vmem:[%s1693_s1 + $0x390] sm:$0xff]  ;;  %v126_v6 = vld [vmem:[%s1693_s1 + $0x200] sm:$0xff] }
  0x2e   :  { %431 = vmatpush.msrb.mxu0 %v136_v22  ;;  %456 = vmatpush.msrb.mxu1 %v153_v23  ;;  %v143_v7 = vld [vmem:[%s1693_s1 + $0x288] sm:$0xff]  ;;  %v158_v8 = vld [vmem:[%s1693_s1 + $0x300] sm:$0xff]  ;;  %v20_v11 = vld [vmem:[%s1694_s0 + $0x30] sm:$0xff] }
  0x2f   :  { %483 = vmatpush.msrb.mxu2 %v168_v24  ;;  %508 = vmatpush.msrb.mxu3 %v185_v25  ;;  %v175_v9 = vld [vmem:[%s1693_s1 + $0x388] sm:$0xff]  ;;  %v18_v10 = vld [vmem:[%s1694_s0 + $0x20] sm:$0xff]  ;;  %v205_v12 = vld [vmem:[%s1693_s1 + $0x478] sm:$0xff] }
  0x30   :  { %432 = vmatpush.msrb.mxu0 %v135_v26  ;;  %457 = vmatpush.msrb.mxu1 %v152_v27  ;;  %v237_v13 = vld [vmem:[%s1693_s1 + $0x578] sm:$0xff]  ;;  %v142_v14 = vld [vmem:[%s1693_s1 + $0x280] sm:$0xff]  ;;  %v19_v16 = vld [vmem:[%s1694_s0 + $0x28] sm:$0xff] }
  0x31   :  { %484 = vmatpush.msrb.mxu2 %v167_v28  ;;  %509 = vmatpush.msrb.mxu3 %v184_v29  ;;  %v174_v15 = vld [vmem:[%s1693_s1 + $0x380] sm:$0xff]  ;;  %v21_v17 = vld [vmem:[%s1694_s0 + $0x38] sm:$0xff]  ;;  %v204_v18 = vld [vmem:[%s1693_s1 + $0x470] sm:$0xff] }
  0x32   :  { %433 = vmatpush.msrb.mxu0 %v134_v30  ;;  %458 = vmatpush.msrb.mxu1 %v151_v31  ;;  %v221_v19 = vld [vmem:[%s1693_s1 + $0x4f8] sm:$0xff]  ;;  %v236_v20 = vld [vmem:[%s1693_s1 + $0x570] sm:$0xff]  ;;  %v203_v22 = vld [vmem:[%s1693_s1 + $0x468] sm:$0xff] }
  0x33   :  { %485 = vmatpush.msrb.mxu2 %v166_v32  ;;  %510 = vmatpush.msrb.mxu3 %v183_v33  ;;  %v253_v21 = vld [vmem:[%s1693_s1 + $0x5f8] sm:$0xff]  ;;  %v220_v23 = vld [vmem:[%s1693_s1 + $0x4f0] sm:$0xff]  ;;  %v235_v24 = vld [vmem:[%s1693_s1 + $0x568] sm:$0xff] }
  0x34   :  { %341 = vmatmul.f32.gmra.mxu0 %v30_v34  ;;  %393 = vmatmul.f32.gmra.mxu2 %v32_v35  ;;  %v252_v25 = vld [vmem:[%s1693_s1 + $0x5f0] sm:$0xff]  ;;  %v202_v26 = vld [vmem:[%s1693_s1 + $0x460] sm:$0xff]  ;;  %v219_v27 = vld [vmem:[%s1693_s1 + $0x4e8] sm:$0xff] }
  0x35   :  { %434 = vmatpush.msrb.mxu0 %v133_v36  ;;  %459 = vmatpush.msrb.mxu1 %v150_v37  ;;  %v234_v28 = vld [vmem:[%s1693_s1 + $0x560] sm:$0xff]  ;;  %v251_v29 = vld [vmem:[%s1693_s1 + $0x5e8] sm:$0xff]  ;;  %v36_v31 = vld [vmem:[%s1694_s0 + $0xb0] sm:$0xff] }
  0x36   :  { %486 = vmatpush.msrb.mxu2 %v165_v38  ;;  %511 = vmatpush.msrb.mxu3 %v182_v39  ;;  %v34_v30 = vld [vmem:[%s1694_s0 + $0xa0] sm:$0xff]  ;;  %v201_v32 = vld [vmem:[%s1693_s1 + $0x458] sm:$0xff]  ;;  %v35_v36 = vld [vmem:[%s1694_s0 + $0xa8] sm:$0xff] }
  0x37   :  { %367 = vmatmul.f32.gmra.mxu1 %v31_v40  ;;  %419 = vmatmul.f32.gmra.mxu3 %v33_v41  ;;  %v218_v33 = vld [vmem:[%s1693_s1 + $0x4e0] sm:$0xff]  ;;  %v233_v34 = vld [vmem:[%s1693_s1 + $0x558] sm:$0xff]  ;;  %v200_v38 = vld [vmem:[%s1693_s1 + $0x450] sm:$0xff] }
  0x38   :  { %435 = vmatpush.msrb.mxu0 %v132_v42  ;;  %460 = vmatpush.msrb.mxu1 %v149_v43  ;;  %v250_v35 = vld [vmem:[%s1693_s1 + $0x5e0] sm:$0xff]  ;;  %v37_v37 = vld [vmem:[%s1694_s0 + $0xb8] sm:$0xff]  ;;  %v232_v40 = vld [vmem:[%s1693_s1 + $0x550] sm:$0xff] }
  0x39   :  { %487 = vmatpush.msrb.mxu2 %v164_v44  ;;  %512 = vmatpush.msrb.mxu3 %v181_v45  ;;  %v217_v39 = vld [vmem:[%s1693_s1 + $0x4d8] sm:$0xff]  ;;  %v199_v42 = vld [vmem:[%s1693_s1 + $0x448] sm:$0xff]  ;;  %v216_v43 = vld [vmem:[%s1693_s1 + $0x4d0] sm:$0xff] }
  0x3a   :  { %436 = vmatpush.msrb.mxu0 %v131_v46  ;;  %461 = vmatpush.msrb.mxu1 %v148_v47  ;;  %v249_v41 = vld [vmem:[%s1693_s1 + $0x5d8] sm:$0xff]  ;;  %v231_v44 = vld [vmem:[%s1693_s1 + $0x548] sm:$0xff]  ;;  %v248_v45 = vld [vmem:[%s1693_s1 + $0x5d0] sm:$0xff] }
  0x3b   :  { %488 = vmatpush.msrb.mxu2 %v163_v48  ;;  %513 = vmatpush.msrb.mxu3 %v180_v49  ;;  %v198_v46 = vld [vmem:[%s1693_s1 + $0x440] sm:$0xff]  ;;  %v215_v47 = vld [vmem:[%s1693_s1 + $0x4c8] sm:$0xff] }
  0x3c   :  { %437 = vmatpush.msrb.mxu0 %v130_v50  ;;  %462 = vmatpush.msrb.mxu1 %v147_v51  ;;  %v230_v48 = vld [vmem:[%s1693_s1 + $0x540] sm:$0xff]  ;;  %v247_v49 = vld [vmem:[%s1693_s1 + $0x5c8] sm:$0xff]  ;;  %v52_v51 = vld [vmem:[%s1694_s0 + $0x130] sm:$0x3] }
  0x3d   :  { %489 = vmatpush.msrb.mxu2 %v162_v52  ;;  %514 = vmatpush.msrb.mxu3 %v179_v53  ;;  %v50_v50 = vld [vmem:[%s1694_s0 + $0x120] sm:$0x3]  ;;  %v197_v52 = vld [vmem:[%s1693_s1 + $0x438] sm:$0xff] }
  0x3e   :  { %344 = vmatmul.f32.gmra.mxu0 %v46_v54  ;;  %396 = vmatmul.f32.gmra.mxu2 %v48_v55  ;;  %v214_v53 = vld [vmem:[%s1693_s1 + $0x4c0] sm:$0xff]  ;;  %v229_v54 = vld [vmem:[%s1693_s1 + $0x538] sm:$0xff] }
  0x3f   :  { %438 = vmatpush.msrb.mxu0 %v129_v56  ;;  %463 = vmatpush.msrb.mxu1 %v146_v57  ;;  %v246_v55 = vld [vmem:[%s1693_s1 + $0x5c0] sm:$0xff]  ;;  %v51_v56 = vld [vmem:[%s1694_s0 + $0x128] sm:$0x3]  ;;  %v53_v57 = vld [vmem:[%s1694_s0 + $0x138] sm:$0x3] }
  0x40   :  { %490 = vmatpush.msrb.mxu2 %v161_v58  ;;  %515 = vmatpush.msrb.mxu3 %v178_v59  ;;  %v196_v58 = vld [vmem:[%s1693_s1 + $0x430] sm:$0xff]  ;;  %v213_v59 = vld [vmem:[%s1693_s1 + $0x4b8] sm:$0xff] }
  0x41   :  { %370 = vmatmul.f32.gmra.mxu1 %v47_v60  ;;  %422 = vmatmul.f32.gmra.mxu3 %v49_v61  ;;  %v228_v60 = vld [vmem:[%s1693_s1 + $0x530] sm:$0xff]  ;;  %v245_v61 = vld [vmem:[%s1693_s1 + $0x5b8] sm:$0xff] }
  0x42   :  { %439 = vmatpush.msrb.mxu0 %v128_v62  ;;  %464 = vmatpush.msrb.mxu1 %v145_v63  ;;  %v195_v62 = vld [vmem:[%s1693_s1 + $0x428] sm:$0xff]  ;;  %v212_v63 = vld [vmem:[%s1693_s1 + $0x4b0] sm:$0xff] }
  0x43   :  { %491 = vmatpush.msrb.mxu2 %v160_v0  ;;  %516 = vmatpush.msrb.mxu3 %v177_v1  ;;  %v227_v0 = vld [vmem:[%s1693_s1 + $0x528] sm:$0xff]  ;;  %v244_v1 = vld [vmem:[%s1693_s1 + $0x5b0] sm:$0xff] }
  0x44   :  { %440 = vmatpush.msrb.mxu0 %v127_v2  ;;  %465 = vmatpush.msrb.mxu1 %v144_v3  ;;  %v194_v2 = vld [vmem:[%s1693_s1 + $0x420] sm:$0xff]  ;;  %v211_v3 = vld [vmem:[%s1693_s1 + $0x4a8] sm:$0xff] }
  0x45   :  { %492 = vmatpush.msrb.mxu2 %v159_v4  ;;  %517 = vmatpush.msrb.mxu3 %v176_v5  ;;  %v226_v4 = vld [vmem:[%s1693_s1 + $0x520] sm:$0xff]  ;;  %v243_v5 = vld [vmem:[%s1693_s1 + $0x5a8] sm:$0xff] }
  0x46   :  { %441 = vmatpush.msrb.mxu0 %v126_v6  ;;  %466 = vmatpush.msrb.mxu1 %v143_v7  ;;  %v193_v6 = vld [vmem:[%s1693_s1 + $0x418] sm:$0xff]  ;;  %v210_v7 = vld [vmem:[%s1693_s1 + $0x4a0] sm:$0xff] }
  0x47   :  { %493 = vmatpush.msrb.mxu2 %v158_v8  ;;  %518 = vmatpush.msrb.mxu3 %v175_v9  ;;  %v225_v8 = vld [vmem:[%s1693_s1 + $0x518] sm:$0xff]  ;;  %v242_v9 = vld [vmem:[%s1693_s1 + $0x5a0] sm:$0xff] }
  0x48   :  { %442 = vmatmul.f32.vlgmr.msrb.gmra.mxu0 %v18_v10  ;;  %494 = vmatmul.f32.vlgmr.msrb.gmra.mxu2 %v20_v11  ;;  %v192_v10 = vld [vmem:[%s1693_s1 + $0x410] sm:$0xff]  ;;  %v209_v11 = vld [vmem:[%s1693_s1 + $0x498] sm:$0xff] }
  0x49   :  { %530 = vmatpush.msra.mxu0 %v205_v12  ;;  %582 = vmatpush.msra.mxu2 %v237_v13  ;;  %v224_v12 = vld [vmem:[%s1693_s1 + $0x510] sm:$0xff]  ;;  %v241_v13 = vld [vmem:[%s1693_s1 + $0x598] sm:$0xff] }
  0x4a   :  { %467 = vmatpush.msrb.mxu1 %v142_v14  ;;  %519 = vmatpush.msrb.mxu3 %v174_v15  ;;  %v191_v14 = vld [vmem:[%s1693_s1 + $0x408] sm:$0xff]  ;;  %v208_v15 = vld [vmem:[%s1693_s1 + $0x490] sm:$0xff] }
  0x4b   :  { %468 = vmatmul.f32.vlgmr.msrb.gmra.mxu1 %v19_v16  ;;  %520 = vmatmul.f32.vlgmr.msrb.gmra.mxu3 %v21_v17  ;;  %v223_v16 = vld [vmem:[%s1693_s1 + $0x508] sm:$0xff]  ;;  %v240_v17 = vld [vmem:[%s1693_s1 + $0x590] sm:$0xff] }
  0x4c   :  { %531 = vmatpush.msra.mxu0 %v204_v18  ;;  %556 = vmatpush.msra.mxu1 %v221_v19  ;;  %v190_v18 = vld [vmem:[%s1693_s1 + $0x400] sm:$0xff]  ;;  %v207_v19 = vld [vmem:[%s1693_s1 + $0x488] sm:$0xff] }
  0x4d   :  { %583 = vmatpush.msra.mxu2 %v236_v20  ;;  %608 = vmatpush.msra.mxu3 %v253_v21  ;;  %v222_v20 = vld [vmem:[%s1693_s1 + $0x500] sm:$0xff]  ;;  %v239_v21 = vld [vmem:[%s1693_s1 + $0x588] sm:$0xff] }
  0x4e   :  { %532 = vmatpush.msra.mxu0 %v203_v22  ;;  %557 = vmatpush.msra.mxu1 %v220_v23  ;;  %v22_v22 = vld [vmem:[%s1694_s0 + $0x40] sm:$0xff]  ;;  %v24_v23 = vld [vmem:[%s1694_s0 + $0x50] sm:$0xff] }
  0x4f   :  { %584 = vmatpush.msra.mxu2 %v235_v24  ;;  %609 = vmatpush.msra.mxu3 %v252_v25  ;;  %v269_v24 = vld [vmem:[%s1693_s1 + $0x678] sm:$0xff] }
  0x50   :  { %533 = vmatpush.msra.mxu0 %v202_v26  ;;  %558 = vmatpush.msra.mxu1 %v219_v27  ;;  %v301_v25 = vld [vmem:[%s1693_s1 + $0x778] sm:$0xff]  ;;  %v206_v26 = vld [vmem:[%s1693_s1 + $0x480] sm:$0xff] }
  0x51   :  { %585 = vmatpush.msra.mxu2 %v234_v28  ;;  %610 = vmatpush.msra.mxu3 %v251_v29  ;;  %v238_v27 = vld [vmem:[%s1693_s1 + $0x580] sm:$0xff]  ;;  %v23_v28 = vld [vmem:[%s1694_s0 + $0x48] sm:$0xff]  ;;  %v25_v29 = vld [vmem:[%s1694_s0 + $0x58] sm:$0xff] }
  0x52   :  { %445 = vmatmul.f32.gmra.mxu0 %v34_v30  ;;  %497 = vmatmul.f32.gmra.mxu2 %v36_v31  ;;  %v268_v30 = vld [vmem:[%s1693_s1 + $0x670] sm:$0xff]  ;;  %v285_v31 = vld [vmem:[%s1693_s1 + $0x6f8] sm:$0xff] }
  0x53   :  { %534 = vmatpush.msra.mxu0 %v201_v32  ;;  %559 = vmatpush.msra.mxu1 %v218_v33  ;;  %v300_v32 = vld [vmem:[%s1693_s1 + $0x770] sm:$0xff]  ;;  %v317_v33 = vld [vmem:[%s1693_s1 + $0x7f8] sm:$0xff] }
  0x54   :  { %586 = vmatpush.msra.mxu2 %v233_v34  ;;  %611 = vmatpush.msra.mxu3 %v250_v35  ;;  %v267_v34 = vld [vmem:[%s1693_s1 + $0x668] sm:$0xff]  ;;  %v284_v35 = vld [vmem:[%s1693_s1 + $0x6f0] sm:$0xff] }
  0x55   :  { %471 = vmatmul.f32.gmra.mxu1 %v35_v36  ;;  %523 = vmatmul.f32.gmra.mxu3 %v37_v37  ;;  %v299_v36 = vld [vmem:[%s1693_s1 + $0x768] sm:$0xff]  ;;  %v316_v37 = vld [vmem:[%s1693_s1 + $0x7f0] sm:$0xff] }
  0x56   :  { %535 = vmatpush.msra.mxu0 %v200_v38  ;;  %560 = vmatpush.msra.mxu1 %v217_v39  ;;  %v266_v38 = vld [vmem:[%s1693_s1 + $0x660] sm:$0xff]  ;;  %v283_v39 = vld [vmem:[%s1693_s1 + $0x6e8] sm:$0xff] }
  0x57   :  { %587 = vmatpush.msra.mxu2 %v232_v40  ;;  %612 = vmatpush.msra.mxu3 %v249_v41  ;;  %v298_v40 = vld [vmem:[%s1693_s1 + $0x760] sm:$0xff]  ;;  %v315_v41 = vld [vmem:[%s1693_s1 + $0x7e8] sm:$0xff] }
  0x58   :  { %536 = vmatpush.msra.mxu0 %v199_v42  ;;  %561 = vmatpush.msra.mxu1 %v216_v43  ;;  %v38_v42 = vld [vmem:[%s1694_s0 + $0xc0] sm:$0xff]  ;;  %v40_v43 = vld [vmem:[%s1694_s0 + $0xd0] sm:$0xff] }
  0x59   :  { %588 = vmatpush.msra.mxu2 %v231_v44  ;;  %613 = vmatpush.msra.mxu3 %v248_v45  ;;  %v265_v44 = vld [vmem:[%s1693_s1 + $0x658] sm:$0xff]  ;;  %v282_v45 = vld [vmem:[%s1693_s1 + $0x6e0] sm:$0xff] }
  0x5a   :  { %537 = vmatpush.msra.mxu0 %v198_v46  ;;  %562 = vmatpush.msra.mxu1 %v215_v47  ;;  %v297_v46 = vld [vmem:[%s1693_s1 + $0x758] sm:$0xff]  ;;  %v314_v47 = vld [vmem:[%s1693_s1 + $0x7e0] sm:$0xff] }
  0x5b   :  { %589 = vmatpush.msra.mxu2 %v230_v48  ;;  %614 = vmatpush.msra.mxu3 %v247_v49  ;;  %v39_v48 = vld [vmem:[%s1694_s0 + $0xc8] sm:$0xff]  ;;  %v41_v49 = vld [vmem:[%s1694_s0 + $0xd8] sm:$0xff] }
  0x5c   :  { %448 = vmatmul.f32.gmra.mxu0 %v50_v50  ;;  %500 = vmatmul.f32.gmra.mxu2 %v52_v51  ;;  %v264_v50 = vld [vmem:[%s1693_s1 + $0x650] sm:$0xff]  ;;  %v281_v51 = vld [vmem:[%s1693_s1 + $0x6d8] sm:$0xff] }
  0x5d   :  { %538 = vmatpush.msra.mxu0 %v197_v52  ;;  %563 = vmatpush.msra.mxu1 %v214_v53  ;;  %v296_v52 = vld [vmem:[%s1693_s1 + $0x750] sm:$0xff]  ;;  %v313_v53 = vld [vmem:[%s1693_s1 + $0x7d8] sm:$0xff] }
  0x5e   :  { %590 = vmatpush.msra.mxu2 %v229_v54  ;;  %615 = vmatpush.msra.mxu3 %v246_v55  ;;  %v263_v54 = vld [vmem:[%s1693_s1 + $0x648] sm:$0xff]  ;;  %v280_v55 = vld [vmem:[%s1693_s1 + $0x6d0] sm:$0xff] }
  0x5f   :  { %474 = vmatmul.f32.gmra.mxu1 %v51_v56  ;;  %526 = vmatmul.f32.gmra.mxu3 %v53_v57  ;;  %v295_v56 = vld [vmem:[%s1693_s1 + $0x748] sm:$0xff]  ;;  %v312_v57 = vld [vmem:[%s1693_s1 + $0x7d0] sm:$0xff] }
  0x60   :  { %539 = vmatpush.msra.mxu0 %v196_v58  ;;  %564 = vmatpush.msra.mxu1 %v213_v59  ;;  %v262_v58 = vld [vmem:[%s1693_s1 + $0x640] sm:$0xff]  ;;  %v279_v59 = vld [vmem:[%s1693_s1 + $0x6c8] sm:$0xff] }
  0x61   :  { %591 = vmatpush.msra.mxu2 %v228_v60  ;;  %616 = vmatpush.msra.mxu3 %v245_v61  ;;  %v294_v60 = vld [vmem:[%s1693_s1 + $0x740] sm:$0xff]  ;;  %v311_v61 = vld [vmem:[%s1693_s1 + $0x7c8] sm:$0xff] }
  0x62   :  { %540 = vmatpush.msra.mxu0 %v195_v62  ;;  %565 = vmatpush.msra.mxu1 %v212_v63  ;;  %v54_v62 = vld [vmem:[%s1694_s0 + $0x140] sm:$0x3]  ;;  %v56_v63 = vld [vmem:[%s1694_s0 + $0x150] sm:$0x3] }
  0x63   :  { %592 = vmatpush.msra.mxu2 %v227_v0  ;;  %617 = vmatpush.msra.mxu3 %v244_v1  ;;  %v261_v0 = vld [vmem:[%s1693_s1 + $0x638] sm:$0xff]  ;;  %v278_v1 = vld [vmem:[%s1693_s1 + $0x6c0] sm:$0xff] }
  0x64   :  { %541 = vmatpush.msra.mxu0 %v194_v2  ;;  %566 = vmatpush.msra.mxu1 %v211_v3  ;;  %v293_v2 = vld [vmem:[%s1693_s1 + $0x738] sm:$0xff]  ;;  %v310_v3 = vld [vmem:[%s1693_s1 + $0x7c0] sm:$0xff] }
  0x65   :  { %593 = vmatpush.msra.mxu2 %v226_v4  ;;  %618 = vmatpush.msra.mxu3 %v243_v5  ;;  %v55_v4 = vld [vmem:[%s1694_s0 + $0x148] sm:$0x3]  ;;  %v57_v5 = vld [vmem:[%s1694_s0 + $0x158] sm:$0x3] }
  0x66   :  { %542 = vmatpush.msra.mxu0 %v193_v6  ;;  %567 = vmatpush.msra.mxu1 %v210_v7  ;;  %v260_v6 = vld [vmem:[%s1693_s1 + $0x630] sm:$0xff]  ;;  %v277_v7 = vld [vmem:[%s1693_s1 + $0x6b8] sm:$0xff] }
  0x67   :  { %594 = vmatpush.msra.mxu2 %v225_v8  ;;  %619 = vmatpush.msra.mxu3 %v242_v9  ;;  %v292_v8 = vld [vmem:[%s1693_s1 + $0x730] sm:$0xff]  ;;  %v309_v9 = vld [vmem:[%s1693_s1 + $0x7b8] sm:$0xff] }
  0x68   :  { %543 = vmatpush.msra.mxu0 %v192_v10  ;;  %568 = vmatpush.msra.mxu1 %v209_v11  ;;  %v259_v10 = vld [vmem:[%s1693_s1 + $0x628] sm:$0xff]  ;;  %v276_v11 = vld [vmem:[%s1693_s1 + $0x6b0] sm:$0xff] }
  0x69   :  { %595 = vmatpush.msra.mxu2 %v224_v12  ;;  %620 = vmatpush.msra.mxu3 %v241_v13  ;;  %v291_v12 = vld [vmem:[%s1693_s1 + $0x728] sm:$0xff]  ;;  %v308_v13 = vld [vmem:[%s1693_s1 + $0x7b0] sm:$0xff] }
  0x6a   :  { %544 = vmatpush.msra.mxu0 %v191_v14  ;;  %569 = vmatpush.msra.mxu1 %v208_v15  ;;  %v258_v14 = vld [vmem:[%s1693_s1 + $0x620] sm:$0xff]  ;;  %v275_v15 = vld [vmem:[%s1693_s1 + $0x6a8] sm:$0xff] }
  0x6b   :  { %596 = vmatpush.msra.mxu2 %v223_v16  ;;  %621 = vmatpush.msra.mxu3 %v240_v17  ;;  %v290_v16 = vld [vmem:[%s1693_s1 + $0x720] sm:$0xff]  ;;  %v307_v17 = vld [vmem:[%s1693_s1 + $0x7a8] sm:$0xff] }
  0x6c   :  { %545 = vmatpush.msra.mxu0 %v190_v18  ;;  %570 = vmatpush.msra.mxu1 %v207_v19  ;;  %v257_v18 = vld [vmem:[%s1693_s1 + $0x618] sm:$0xff]  ;;  %v274_v19 = vld [vmem:[%s1693_s1 + $0x6a0] sm:$0xff] }
  0x6d   :  { %597 = vmatpush.msra.mxu2 %v222_v20  ;;  %622 = vmatpush.msra.mxu3 %v239_v21  ;;  %v289_v20 = vld [vmem:[%s1693_s1 + $0x718] sm:$0xff]  ;;  %v306_v21 = vld [vmem:[%s1693_s1 + $0x7a0] sm:$0xff] }
  0x6e   :  { %546 = vmatmul.f32.vlgmr.msra.gmra.mxu0 %v22_v22  ;;  %598 = vmatmul.f32.vlgmr.msra.gmra.mxu2 %v24_v23  ;;  %v256_v22 = vld [vmem:[%s1693_s1 + $0x610] sm:$0xff]  ;;  %v273_v23 = vld [vmem:[%s1693_s1 + $0x698] sm:$0xff] }
  0x6f   :  { %634 = vmatpush.msrb.mxu0 %v269_v24  ;;  %686 = vmatpush.msrb.mxu2 %v301_v25  ;;  %v288_v24 = vld [vmem:[%s1693_s1 + $0x710] sm:$0xff]  ;;  %v305_v25 = vld [vmem:[%s1693_s1 + $0x798] sm:$0xff] }
  0x70   :  { %571 = vmatpush.msra.mxu1 %v206_v26  ;;  %623 = vmatpush.msra.mxu3 %v238_v27  ;;  %v255_v26 = vld [vmem:[%s1693_s1 + $0x608] sm:$0xff]  ;;  %v272_v27 = vld [vmem:[%s1693_s1 + $0x690] sm:$0xff] }
  0x71   :  { %572 = vmatmul.f32.vlgmr.msra.gmra.mxu1 %v23_v28  ;;  %624 = vmatmul.f32.vlgmr.msra.gmra.mxu3 %v25_v29  ;;  %v287_v28 = vld [vmem:[%s1693_s1 + $0x708] sm:$0xff]  ;;  %v304_v29 = vld [vmem:[%s1693_s1 + $0x790] sm:$0xff] }
  0x72   :  { %635 = vmatpush.msrb.mxu0 %v268_v30  ;;  %660 = vmatpush.msrb.mxu1 %v285_v31  ;;  %v254_v30 = vld [vmem:[%s1693_s1 + $0x600] sm:$0xff]  ;;  %v271_v31 = vld [vmem:[%s1693_s1 + $0x688] sm:$0xff] }
  0x73   :  { %687 = vmatpush.msrb.mxu2 %v300_v32  ;;  %712 = vmatpush.msrb.mxu3 %v317_v33  ;;  %v286_v32 = vld [vmem:[%s1693_s1 + $0x700] sm:$0xff]  ;;  %v303_v33 = vld [vmem:[%s1693_s1 + $0x788] sm:$0xff] }
  0x74   :  { %636 = vmatpush.msrb.mxu0 %v267_v34  ;;  %661 = vmatpush.msrb.mxu1 %v284_v35  ;;  %v26_v34 = vld [vmem:[%s1694_s0 + $0x60] sm:$0xff]  ;;  %v28_v35 = vld [vmem:[%s1694_s0 + $0x70] sm:$0xff] }
  0x75   :  { %688 = vmatpush.msrb.mxu2 %v299_v36  ;;  %713 = vmatpush.msrb.mxu3 %v316_v37  ;;  %v270_v36 = vld [vmem:[%s1693_s1 + $0x680] sm:$0xff] }
  0x76   :  { %637 = vmatpush.msrb.mxu0 %v266_v38  ;;  %662 = vmatpush.msrb.mxu1 %v283_v39  ;;  %v302_v37 = vld [vmem:[%s1693_s1 + $0x780] sm:$0xff]  ;;  %v27_v38 = vld [vmem:[%s1694_s0 + $0x68] sm:$0xff]  ;;  %v29_v39 = vld [vmem:[%s1694_s0 + $0x78] sm:$0xff] }
  0x77   :  { %689 = vmatpush.msrb.mxu2 %v298_v40  ;;  %714 = vmatpush.msrb.mxu3 %v315_v41  ;;  %v42_v40 = vld [vmem:[%s1694_s0 + $0xe0] sm:$0xff]  ;;  %v44_v41 = vld [vmem:[%s1694_s0 + $0xf0] sm:$0xff] }
  0x78   :  { %549 = vmatmul.f32.gmra.mxu0 %v38_v42  ;;  %601 = vmatmul.f32.gmra.mxu2 %v40_v43  ;;  %v43_v42 = vld [vmem:[%s1694_s0 + $0xe8] sm:$0xff]  ;;  %v45_v43 = vld [vmem:[%s1694_s0 + $0xf8] sm:$0xff] }
  0x79   :  { %638 = vmatpush.msrb.mxu0 %v265_v44  ;;  %663 = vmatpush.msrb.mxu1 %v282_v45  ;;  %v58_v44 = vld [vmem:[%s1694_s0 + $0x160] sm:$0x3]  ;;  %v60_v45 = vld [vmem:[%s1694_s0 + $0x170] sm:$0x3] }
  0x7a   :  { %690 = vmatpush.msrb.mxu2 %v297_v46  ;;  %715 = vmatpush.msrb.mxu3 %v314_v47  ;;  %v59_v46 = vld [vmem:[%s1694_s0 + $0x168] sm:$0x3]  ;;  %v61_v47 = vld [vmem:[%s1694_s0 + $0x178] sm:$0x3] }
  0x7b   :  { %575 = vmatmul.f32.gmra.mxu1 %v39_v48  ;;  %627 = vmatmul.f32.gmra.mxu3 %v41_v49 }
  0x7c   :  { %639 = vmatpush.msrb.mxu0 %v264_v50  ;;  %664 = vmatpush.msrb.mxu1 %v281_v51 }
  0x7d   :  { %691 = vmatpush.msrb.mxu2 %v296_v52  ;;  %716 = vmatpush.msrb.mxu3 %v313_v53 }
  0x7e   :  { %640 = vmatpush.msrb.mxu0 %v263_v54  ;;  %665 = vmatpush.msrb.mxu1 %v280_v55 }
  0x7f   :  { %692 = vmatpush.msrb.mxu2 %v295_v56  ;;  %717 = vmatpush.msrb.mxu3 %v312_v57 }
  0x80   :  { %641 = vmatpush.msrb.mxu0 %v262_v58  ;;  %666 = vmatpush.msrb.mxu1 %v279_v59 }
  0x81   :  { %693 = vmatpush.msrb.mxu2 %v294_v60  ;;  %718 = vmatpush.msrb.mxu3 %v311_v61 }
  0x82   :  { %552 = vmatmul.f32.gmra.mxu0 %v54_v62  ;;  %604 = vmatmul.f32.gmra.mxu2 %v56_v63 }
  0x83   :  { %642 = vmatpush.msrb.mxu0 %v261_v0  ;;  %667 = vmatpush.msrb.mxu1 %v278_v1 }
  0x84   :  { %694 = vmatpush.msrb.mxu2 %v293_v2  ;;  %719 = vmatpush.msrb.mxu3 %v310_v3  ;;  %v748_v2 = vld [vmem:[%s1695_s2] ss:$0 sm:$0xff] }
  0x85   :  { %578 = vmatmul.f32.gmra.mxu1 %v55_v4  ;;  %630 = vmatmul.f32.gmra.mxu3 %v57_v5 }
  0x86   :  { %643 = vmatpush.msrb.mxu0 %v260_v6  ;;  %668 = vmatpush.msrb.mxu1 %v277_v7 }
  0x87   :  { %695 = vmatpush.msrb.mxu2 %v292_v8  ;;  %720 = vmatpush.msrb.mxu3 %v309_v9 }
  0x88   :  { %644 = vmatpush.msrb.mxu0 %v259_v10  ;;  %669 = vmatpush.msrb.mxu1 %v276_v11 }
  0x89   :  { %696 = vmatpush.msrb.mxu2 %v291_v12  ;;  %721 = vmatpush.msrb.mxu3 %v308_v13 }
  0x8a   :  { %645 = vmatpush.msrb.mxu0 %v258_v14  ;;  %670 = vmatpush.msrb.mxu1 %v275_v15 }
  0x8b   :  { %697 = vmatpush.msrb.mxu2 %v290_v16  ;;  %722 = vmatpush.msrb.mxu3 %v307_v17 }
  0x8c   :  { %646 = vmatpush.msrb.mxu0 %v257_v18  ;;  %671 = vmatpush.msrb.mxu1 %v274_v19 }
  0x8d   :  { %698 = vmatpush.msrb.mxu2 %v289_v20  ;;  %723 = vmatpush.msrb.mxu3 %v306_v21 }
  0x8e   :  { %647 = vmatpush.msrb.mxu0 %v256_v22  ;;  %672 = vmatpush.msrb.mxu1 %v273_v23 }
  0x8f   :  { %699 = vmatpush.msrb.mxu2 %v288_v24  ;;  %724 = vmatpush.msrb.mxu3 %v305_v25 }
  0x90   :  { %648 = vmatpush.msrb.mxu0 %v255_v26  ;;  %673 = vmatpush.msrb.mxu1 %v272_v27 }
  0x91   :  { %700 = vmatpush.msrb.mxu2 %v287_v28  ;;  %725 = vmatpush.msrb.mxu3 %v304_v29 }
  0x92   :  { %649 = vmatpush.msrb.mxu0 %v254_v30  ;;  %674 = vmatpush.msrb.mxu1 %v271_v31 }
  0x93   :  { %701 = vmatpush.msrb.mxu2 %v286_v32  ;;  %726 = vmatpush.msrb.mxu3 %v303_v33 }
  0x94   :  { %650 = vmatmul.f32.vlgmr.msrb.gmra.mxu0 %v26_v34  ;;  %702 = vmatmul.f32.vlgmr.msrb.gmra.mxu2 %v28_v35 }
  0x95   :  { %675 = vmatpush.msrb.mxu1 %v270_v36  ;;  %727 = vmatpush.msrb.mxu3 %v302_v37 }
  0x96   :  { %676 = vmatmul.f32.vlgmr.msrb.gmra.mxu1 %v27_v38  ;;  %728 = vmatmul.f32.vlgmr.msrb.gmra.mxu3 %v29_v39 }
  0x9c   :  { %653 = vmatmul.f32.gmra.mxu0 %v42_v40  ;;  %705 = vmatmul.f32.gmra.mxu2 %v44_v41 }
  0x9e   :  { %679 = vmatmul.f32.gmra.mxu1 %v43_v42  ;;  %731 = vmatmul.f32.gmra.mxu3 %v45_v43 }
  0xa4   :  { %656 = vmatmul.f32.gmra.mxu0 %v58_v44  ;;  %708 = vmatmul.f32.gmra.mxu2 %v60_v45 }
  0xa6   :  { %682 = vmatmul.f32.gmra.mxu1 %v59_v46  ;;  %734 = vmatmul.f32.gmra.mxu3 %v61_v47 }
  0xa7   :  { %v339_v48 = vpop.f32.mrf.mxu0 }
  0xa8   :  { %v340_v4 = vadd.f32 %v748_v2, %v339_v48 }
  0xaa   :  { %v365_v49 = vpop.f32.mrf.mxu1 }
  0xab   :  { %v366_v7 = vadd.f32 %v365_v49, %v340_v4 }
  0xad   :  { %v391_v50 = vpop.f32.mrf.mxu2 }
  0xae   :  { %v392_v9 = vadd.f32 %v391_v50, %v366_v7 }
  0xb0   :  { %v417_v51 = vpop.f32.mrf.mxu3 }
  0xb1   :  { %v342_v52 = vpop.f32.mrf.mxu0  ;;  %v418_v14 = vadd.f32 %v417_v51, %v392_v9 }
  0xb2   :  { %v343_v10 = vadd.f32 %v748_v2, %v342_v52 }
  0xb4   :  { %v368_v53 = vpop.f32.mrf.mxu1 }
  0xb5   :  { %v369_v15 = vadd.f32 %v368_v53, %v343_v10 }
  0xb7   :  { %v394_v54 = vpop.f32.mrf.mxu2 }
  0xb8   :  { %v395_v17 = vadd.f32 %v394_v54, %v369_v15 }
  0xba   :  { %v420_v55 = vpop.f32.mrf.mxu3 }
  0xbb   :  { %v345_v56 = vpop.f32.mrf.mxu0  ;;  %v421_v22 = vadd.f32 %v420_v55, %v395_v17 }
  0xbc   :  { %v346_v18 = vadd.f32 %v748_v2, %v345_v56 }
  0xbe   :  { %v371_v57 = vpop.f32.mrf.mxu1 }
  0xbf   :  { %v372_v23 = vadd.f32 %v371_v57, %v346_v18 }
  0xc1   :  { %v397_v58 = vpop.f32.mrf.mxu2 }
  0xc2   :  { %v398_v28 = vadd.f32 %v397_v58, %v372_v23 }
  0xc4   :  { %v423_v59 = vpop.f32.mrf.mxu3 }
  0xc5   :  { %v443_v60 = vpop.f32.mrf.mxu0  ;;  %v424_v32 = vadd.f32 %v423_v59, %v398_v28 }
  0xc6   :  { %v444_v19 = vadd.f32 %v443_v60, %v418_v14 }
  0xc8   :  { %v469_v61 = vpop.f32.mrf.mxu1 }
  0xc9   :  { %v470_v24 = vadd.f32 %v469_v61, %v444_v19 }
  0xcb   :  { %v495_v62 = vpop.f32.mrf.mxu2 }
  0xcc   :  { %v496_v26 = vadd.f32 %v495_v62, %v470_v24 }
  0xce   :  { %v521_v63 = vpop.f32.mrf.mxu3 }
  0xcf   :  { %v446_v0 = vpop.f32.mrf.mxu0  ;;  %v522_v30 = vadd.f32 %v521_v63, %v496_v26 }
  0xd0   :  { %v447_v29 = vadd.f32 %v446_v0, %v421_v22 }
  0xd2   :  { %v472_v1 = vpop.f32.mrf.mxu1 }
  0xd3   :  { %v473_v33 = vadd.f32 %v472_v1, %v447_v29 }
  0xd5   :  { %v498_v3 = vpop.f32.mrf.mxu2 }
  0xd6   :  { %v499_v36 = vadd.f32 %v498_v3, %v473_v33 }
  0xd8   :  { %v524_v5 = vpop.f32.mrf.mxu3 }
  0xd9   :  { %v449_v6 = vpop.f32.mrf.mxu0  ;;  %v525_v41 = vadd.f32 %v524_v5, %v499_v36 }
  0xda   :  { %v450_v38 = vadd.f32 %v449_v6, %v424_v32 }
  0xdc   :  { %v475_v8 = vpop.f32.mrf.mxu1 }
  0xdd   :  { %v476_v43 = vadd.f32 %v475_v8, %v450_v38 }
  0xdf   :  { %v501_v11 = vpop.f32.mrf.mxu2 }
  0xe0   :  { %v502_v46 = vadd.f32 %v501_v11, %v476_v43 }
  0xe2   :  { %v527_v12 = vpop.f32.mrf.mxu3 }
  0xe3   :  { %v528_v53 = vadd.f32 %v527_v12, %v502_v46 }
  0xeb   :  { %v547_v13 = vpop.f32.mrf.mxu0 }
  0xec   :  { %v548_v34 = vadd.f32 %v547_v13, %v522_v30 }
  0xee   :  { %v573_v16 = vpop.f32.mrf.mxu1 }
  0xef   :  { %v574_v39 = vadd.f32 %v573_v16, %v548_v34 }
  0xf1   :  { %v599_v20 = vpop.f32.mrf.mxu2 }
  0xf2   :  { %v600_v42 = vadd.f32 %v599_v20, %v574_v39 }
  0xf4   :  { %v625_v21 = vpop.f32.mrf.mxu3 }
  0xf5   :  { %v550_v25 = vpop.f32.mrf.mxu0  ;;  %v626_v47 = vadd.f32 %v625_v21, %v600_v42 }
  0xf6   :  { %v551_v44 = vadd.f32 %v550_v25, %v525_v41 }
  0xf8   :  { %v576_v27 = vpop.f32.mrf.mxu1 }
  0xf9   :  { %v577_v50 = vadd.f32 %v576_v27, %v551_v44 }
  0xfb   :  { %v602_v31 = vpop.f32.mrf.mxu2 }
  0xfc   :  { %v603_v54 = vadd.f32 %v602_v31, %v577_v50 }
  0xfe   :  { %v628_v35 = vpop.f32.mrf.mxu3 }
  0xff   :  { %v553_v37 = vpop.f32.mrf.mxu0  ;;  %v629_v58 = vadd.f32 %v628_v35, %v603_v54 }
 0x100   :  { %v554_v55 = vadd.f32 %v553_v37, %v528_v53 }
 0x102   :  { %v579_v40 = vpop.f32.mrf.mxu1 }
 0x103   :  { %v580_v62 = vadd.f32 %v579_v40, %v554_v55 }
 0x105   :  { %v605_v45 = vpop.f32.mrf.mxu2 }
 0x106   :  { %v606_v2 = vadd.f32 %v605_v45, %v580_v62 }
 0x108   :  { %v631_v48 = vpop.f32.mrf.mxu3 }
 0x109   :  { %v632_v6 = vadd.f32 %v631_v48, %v606_v2 }
 0x111   :  { %v651_v49 = vpop.f32.mrf.mxu0 }
 0x112   :  { %v652_v51 = vadd.f32 %v651_v49, %v626_v47 }
 0x113   :  { %v677_v52 = vpop.f32.mrf.mxu1 }
 0x114   :  { %v678_v56 = vadd.f32 %v677_v52, %v652_v51 }
 0x117   :  { %v703_v57 = vpop.f32.mrf.mxu2 }
 0x118   :  { %v704_v59 = vadd.f32 %v703_v57, %v678_v56 }
 0x119   :  { %v654_v60 = vpop.f32.mrf.mxu0  ;;  %v729_v61 = vpop.f32.mrf.mxu3 }
 0x11a   :  { %v655_v63 = vadd.f32 %v654_v60, %v629_v58  ;;  %v730_v0 = vadd.f32 %v729_v61, %v704_v59 }
 0x11b   :  { %v680_v1 = vpop.f32.mrf.mxu1 }
 0x11c   :  { %v738_v3 = vmax.f32 %v730_v0, 0.0  ;;  %v681_v4 = vadd.f32 %v680_v1, %v655_v63 }
 0x11e   :  { %741 = vst [vmem:[%s1696_s3] sm:$0xff] %v738_v3 }
 0x11f   :  { %v706_v5 = vpop.f32.mrf.mxu2 }
 0x120   :  { %v707_v7 = vadd.f32 %v706_v5, %v681_v4 }
 0x121   :  { %v657_v8 = vpop.f32.mrf.mxu0  ;;  %v732_v9 = vpop.f32.mrf.mxu3 }
 0x122   :  { %v658_v10 = vadd.f32 %v657_v8, %v632_v6  ;;  %v733_v11 = vadd.f32 %v732_v9, %v707_v7 }
 0x123   :  { %v683_v12 = vpop.f32.mrf.mxu1 }
 0x124   :  { %v739_v13 = vmax.f32 %v733_v11, 0.0  ;;  %v684_v14 = vadd.f32 %v683_v12, %v658_v10 }
 0x126   :  { %742 = vst [vmem:[%s1696_s3 + $0x8] sm:$0xff] %v739_v13 }
 0x127   :  { %v709_v15 = vpop.f32.mrf.mxu2 }
 0x128   :  { %v710_v16 = vadd.f32 %v709_v15, %v684_v14 }
 0x129   :  { %v735_v17 = vpop.f32.mrf.mxu3 }
 0x12a   :  { %v736_v18 = vadd.f32 %v735_v17, %v710_v16 }
 0x12c   :  { %v740_v19 = vmax.f32 %v736_v18, 0.0 }
 0x12e   :  { %743 = vst [vmem:[%s1696_s3 + $0x10] sm:$0x3] %v740_v19 }

</bundles_post_ra>
